<compile_context>
chip_gen: v5e
topology: v5e:2x2
jax: 0.10.0
libtpu: 0.0.40
codegen_flags: <defaults>
</compile_context>

<pallas_src>
import functools

import jax
import jax.numpy as jnp
from jax import lax
from jax.experimental import pallas as pl
from jax.experimental.pallas import tpu as pltpu

INPUT_DIM = 12
HIDDEN_DIM = 84
OUTPUT_DIM = 1

# Contract the LAST dim of both operands: (84, 12) x (bm, 12) -> (84, bm).
_NT_DIMS = (((1,), (1,)), ((), ()))


def _round_up(a, m):
    return -(-a // m) * m


def _ffw_kernel(x_ref, w1_ref, b1_ref, w2_ref, b2_ref, w3_ref, b3_ref,
                w4_ref, b4_ref, o_ref, *, x_batch_major):
    # ---- fc1: relu(W1 @ X^T + b1) -> (84, bm), carried forward as bf16 ----
    if x_batch_major:
        xb = x_ref[...].astype(jnp.bfloat16)                        # (bm, 12)
        a1 = lax.dot_general(w1_ref[...], xb, _NT_DIMS,
                             preferred_element_type=jnp.float32)     # (84, bm)
    else:
        a1 = jnp.dot(w1_ref[...], x_ref[...],
                     preferred_element_type=jnp.float32)             # (84, bm)
    h1 = jnp.maximum(a1 + b1_ref[...], 0.0).astype(jnp.bfloat16)

    # ---- fc2: relu(W2 @ h1 + b2) + h1 (single bf16 materialization) ----
    a2 = jnp.dot(w2_ref[...], h1, preferred_element_type=jnp.float32)
    h2 = (jnp.maximum(a2 + b2_ref[...], 0.0) + h1).astype(jnp.bfloat16)

    # ---- fc3: relu(W3 @ h2 + b3) + h2 ----
    a3 = jnp.dot(w3_ref[...], h2, preferred_element_type=jnp.float32)
    h3 = (jnp.maximum(a3 + b3_ref[...], 0.0) + h2).astype(jnp.bfloat16)

    # ---- fc4 (N=1): VPU multiply + sublane reduce -> lane-dense (1, bm) ----
    out = jnp.sum(h3.astype(jnp.float32) * w4_ref[...], axis=0, keepdims=True)
    o_ref[...] = (out + b4_ref[...]).astype(o_ref.dtype)


def _make_call(b_pad, bm, x_batch_major):
    kernel = functools.partial(_ffw_kernel, x_batch_major=x_batch_major)
    if x_batch_major:
        x_spec = pl.BlockSpec((bm, INPUT_DIM), lambda i: (i, 0))     # natural layout
    else:
        x_spec = pl.BlockSpec((INPUT_DIM, bm), lambda i: (0, i))     # pre-transposed
    resident = pl.BlockSpec(memory_space=pltpu.MemorySpace.VMEM)     # not pipelined
    return pl.pallas_call(
        kernel,
        out_shape=jax.ShapeDtypeStruct((OUTPUT_DIM, b_pad), jnp.float32),
        grid_spec=pltpu.PrefetchScalarGridSpec(
            num_scalar_prefetch=0,
            grid=(b_pad // bm,),
            in_specs=[x_spec,
                      resident, resident,    # w1, b1
                      resident, resident,    # w2, b2
                      resident, resident,    # w3, b3
                      resident, resident],   # w4, b4
            out_specs=pl.BlockSpec((OUTPUT_DIM, bm), lambda i: (0, i)),
        ),
        compiler_params=pltpu.CompilerParams(
            dimension_semantics=("parallel",),
            vmem_limit_bytes=64 * 1024 * 1024,
        ),
    )


@functools.partial(jax.jit, static_argnames=("bm", "x_batch_major"))
def _ffw_impl(x, params, *, bm, x_batch_major):
    B = x.shape[0]
    b_pad = _round_up(B, bm)

    w1 = params["w1"].astype(jnp.bfloat16)       # (84, 12)  PyTorch (out, in)
    w2 = params["w2"].astype(jnp.bfloat16)       # (84, 84)
    w3 = params["w3"].astype(jnp.bfloat16)       # (84, 84)
    w4 = params["w4"].astype(jnp.float32)        # (84, 1)  column for VPU reduce
    b1 = params["b1"].astype(jnp.float32)        # (84, 1)
    b2 = params["b2"].astype(jnp.float32)        # (84, 1)
    b3 = params["b3"].astype(jnp.float32)        # (84, 1)
    b4 = params["b4"].astype(jnp.float32)        # (1, 1)

    if x_batch_major:
        xin = x                                  # (B, 12) f32 -- no extra HBM pass
        if b_pad != B:
            xin = jnp.pad(xin, ((0, b_pad - B), (0, 0)))
    else:
        xin = x.T.astype(jnp.bfloat16)           # fallback: explicit wrapper pass
        if b_pad != B:
            xin = jnp.pad(xin, ((0, 0), (0, b_pad - B)))

    out = _make_call(b_pad, bm, x_batch_major)(
        xin, w1, b1, w2, b2, w3, b3, w4, b4)
    # (1, B_pad) lane-dense slab -> (B, 1), dropping padding.
    return out[0, :B][:, None]


_X_BATCH_MAJOR = None  # resolved once, on the first call


def ffw_variant_pallas(x, params, *, block_m=8192):
    """x: (B, 12) float32. params: PyTorch-ordered weights (see init_params)."""
    global _X_BATCH_MAJOR
    B = x.shape[0]
    assert x.shape[1] == INPUT_DIM

    # Lane-aligned tile: default 8192, cap 16384 (v7x VMEM), and keep >=2 grid
    # steps when the batch allows it so both v7x TensorCores get work.
    bm = max(128, min((int(block_m) // 128) * 128, 16384))
    bm = min(bm, max(128, _round_up((B + 1) // 2, 128)))

    if _X_BATCH_MAJOR is None:
        try:
            out = _ffw_impl(x, params, bm=bm, x_batch_major=True)
            jax.block_until_ready(out)
            _X_BATCH_MAJOR = True
            return out
        except Exception:
            # NT-matmul/K=12 lowering unavailable -> pre-transposed feed.
            _X_BATCH_MAJOR = False
    return _ffw_impl(x, params, bm=bm, x_batch_major=_X_BATCH_MAJOR)


def init_params(key):
    """Deterministic init mimicking nn.Linear, stored in PyTorch (out, in) order."""
    def linear(key, in_dim, out_dim):
        kw, kb = jax.random.split(key)
        bound = 1.0 / jnp.sqrt(jnp.float32(in_dim))
        w = jax.random.uniform(kw, (out_dim, in_dim), jnp.float32, -bound, bound)
        b = jax.random.uniform(kb, (out_dim, 1), jnp.float32, -bound, bound)
        return w, b

    k1, k2, k3, k4 = jax.random.split(key, 4)
    w1, b1 = linear(k1, INPUT_DIM, HIDDEN_DIM)    # (84, 12), (84, 1)
    w2, b2 = linear(k2, HIDDEN_DIM, HIDDEN_DIM)   # (84, 84), (84, 1)
    w3, b3 = linear(k3, HIDDEN_DIM, HIDDEN_DIM)   # (84, 84), (84, 1)
    w4, b4 = linear(k4, HIDDEN_DIM, OUTPUT_DIM)   # (1, 84),  (1, 1)
    return {"w1": w1, "b1": b1, "w2": w2, "b2": b2, "w3": w3, "b3": b3,
            "w4": w4.T,   # (84, 1) column for the in-kernel VPU reduce
            "b4": b4}


def ffw_variant_ref(x, p):
    """Exact f32 forward matching the PyTorch module (bn=False, dropout inert)."""
    def lin(h, w, b):
        return h @ w.T + b[:, 0]
    h1 = jax.nn.relu(lin(x, p["w1"], p["b1"]))
    h2 = jax.nn.relu(lin(h1, p["w2"], p["b2"])) + h1
    h3 = jax.nn.relu(lin(h2, p["w3"], p["b3"])) + h2
    return h3 @ p["w4"] + p["b4"][0, 0]


def ffw_variant_ref_bf16(x, p):
    """Mimics the kernel's bf16 operand quantization and bf16 residual carry."""
    bf, f32 = jnp.bfloat16, jnp.float32

    def mm(h_bf, w):
        return jnp.dot(h_bf, w.astype(bf).T, preferred_element_type=f32)

    h1 = jax.nn.relu(mm(x.astype(bf), p["w1"]) + p["b1"][:, 0]).astype(bf)
    h2 = (jax.nn.relu(mm(h1, p["w2"]) + p["b2"][:, 0]) + h1).astype(bf)
    h3 = (jax.nn.relu(mm(h2, p["w3"]) + p["b3"][:, 0]) + h2).astype(bf)
    return h3.astype(f32) @ p["w4"] + p["b4"][0, 0]


def _check(out, x, params):
    # Tight check vs a reference with identical bf16 quantization / residual carry.
    ref_q = ffw_variant_ref_bf16(x, params)
    err_q = jnp.max(jnp.abs(out - ref_q))
    assert jnp.allclose(out, ref_q, atol=5e-3, rtol=5e-3), (
        f"mismatch vs bf16-mimic ref: max abs err = {err_q}")
    # Loose sanity check vs the exact f32 PyTorch-semantics forward; bf16 operand
    # quantization + bf16 residual carry keeps the error well under this.
    ref_f = ffw_variant_ref(x, params)
    err_f = jnp.max(jnp.abs(out - ref_f))
    assert jnp.allclose(out, ref_f, atol=1e-1, rtol=1e-1), (
        f"mismatch vs f32 ref: max abs err = {err_f}")


if __name__ == "__main__":
    key = jax.random.PRNGKey(0)
    k_params, k_x1, k_x2 = jax.random.split(key, 3)

    params = init_params(k_params)

    # Small demo batch: one 128-lane tile.
    batch = 8
    x = jax.random.normal(k_x1, (batch, INPUT_DIM), jnp.float32)
    out = jax.block_until_ready(ffw_variant_pallas(x, params))
    assert out.shape == (batch, OUTPUT_DIM)
    _check(out, x, params)

    # Larger, non-multiple batch: exercises padding and a 2-step "parallel" grid
    # (so a v7x chip can shard the batch axis across both TensorCores).
    batch2 = 4100
    x2 = jax.random.normal(k_x2, (batch2, INPUT_DIM), jnp.float32)
    out2 = jax.block_until_ready(ffw_variant_pallas(x2, params))
    assert out2.shape == (batch2, OUTPUT_DIM)
    _check(out2, x2, params)

    print("KERNEL_OK")
</pallas_src>

<mosaic_0001>
module attributes {stable_mosaic.version = 11 : i64} {
  func.func @_ffw_kernel(%arg0: i32, %arg1: memref<128x12xf32, #tpu.memory_space<vmem>>, %arg2: memref<84x12xbf16, #tpu.memory_space<vmem>>, %arg3: memref<84x1xf32, #tpu.memory_space<vmem>>, %arg4: memref<84x84xbf16, #tpu.memory_space<vmem>>, %arg5: memref<84x1xf32, #tpu.memory_space<vmem>>, %arg6: memref<84x84xbf16, #tpu.memory_space<vmem>>, %arg7: memref<84x1xf32, #tpu.memory_space<vmem>>, %arg8: memref<84x1xf32, #tpu.memory_space<vmem>>, %arg9: memref<1x1xf32, #tpu.memory_space<vmem>>, %arg10: memref<1x128xf32, #tpu.memory_space<vmem>>) attributes {dimension_semantics = [#tpu.dimension_semantics<parallel>], iteration_bounds = array<i64: 1>, scalar_prefetch = 0 : i64, scratch_operands = 0 : i64, tpu.core_type = #tpu.core_type<tc>, window_params = [{transform_indices = @transform_0, window_bounds = array<i64: 128, 12>}, {pipeline_mode = #tpu.pipeline_mode<synchronous>, transform_indices = @transform_1, window_bounds = array<i64: 84, 12>}, {pipeline_mode = #tpu.pipeline_mode<synchronous>, transform_indices = @transform_2, window_bounds = array<i64: 84, 1>}, {pipeline_mode = #tpu.pipeline_mode<synchronous>, transform_indices = @transform_3, window_bounds = array<i64: 84, 84>}, {pipeline_mode = #tpu.pipeline_mode<synchronous>, transform_indices = @transform_4, window_bounds = array<i64: 84, 1>}, {pipeline_mode = #tpu.pipeline_mode<synchronous>, transform_indices = @transform_5, window_bounds = array<i64: 84, 84>}, {pipeline_mode = #tpu.pipeline_mode<synchronous>, transform_indices = @transform_6, window_bounds = array<i64: 84, 1>}, {pipeline_mode = #tpu.pipeline_mode<synchronous>, transform_indices = @transform_7, window_bounds = array<i64: 84, 1>}, {pipeline_mode = #tpu.pipeline_mode<synchronous>, transform_indices = @transform_8, window_bounds = array<i64: 1, 1>}, {transform_indices = @transform_9, window_bounds = array<i64: 1, 128>}]} {
    %c0 = arith.constant 0 : index
    %c0_0 = arith.constant 0 : index
    %0 = vector.load %arg1[%c0, %c0_0] : memref<128x12xf32, #tpu.memory_space<vmem>>, vector<128x12xf32>
    %1 = arith.truncf %0 : vector<128x12xf32> to vector<128x12xbf16>
    %c0_1 = arith.constant 0 : index
    %c0_2 = arith.constant 0 : index
    %2 = vector.load %arg2[%c0_1, %c0_2] : memref<84x12xbf16, #tpu.memory_space<vmem>>, vector<84x12xbf16>
    %cst = arith.constant dense<0.000000e+00> : vector<84x128xf32>
    %3 = tpu.matmul %2, %1, %cst {dimension_numbers = #tpu.dot_dimension_numbers<[1], [1], [0], [0], [0, 0, 1, 0], [], []>} : vector<84x12xbf16>, vector<128x12xbf16>, vector<84x128xf32> -> vector<84x128xf32>
    %c0_3 = arith.constant 0 : index
    %c0_4 = arith.constant 0 : index
    %4 = vector.load %arg3[%c0_3, %c0_4] : memref<84x1xf32, #tpu.memory_space<vmem>>, vector<84x1xf32>
    %5 = vector.broadcast %4 : vector<84x1xf32> to vector<84x128xf32>
    %6 = arith.addf %3, %5 : vector<84x128xf32>
    %cst_5 = arith.constant 0.000000e+00 : f32
    %7 = vector.broadcast %cst_5 : f32 to vector<84x128xf32>
    %8 = arith.maximumf %6, %7 : vector<84x128xf32>
    %9 = arith.truncf %8 : vector<84x128xf32> to vector<84x128xbf16>
    %c0_6 = arith.constant 0 : index
    %c0_7 = arith.constant 0 : index
    %10 = vector.load %arg4[%c0_6, %c0_7] : memref<84x84xbf16, #tpu.memory_space<vmem>>, vector<84x84xbf16>
    %cst_8 = arith.constant dense<0.000000e+00> : vector<84x128xf32>
    %11 = tpu.matmul %10, %9, %cst_8 {dimension_numbers = #tpu.dot_dimension_numbers<[1], [0], [0], [1], [0, 0, 1, 1], [], []>} : vector<84x84xbf16>, vector<84x128xbf16>, vector<84x128xf32> -> vector<84x128xf32>
    %c0_9 = arith.constant 0 : index
    %c0_10 = arith.constant 0 : index
    %12 = vector.load %arg5[%c0_9, %c0_10] : memref<84x1xf32, #tpu.memory_space<vmem>>, vector<84x1xf32>
    %13 = vector.broadcast %12 : vector<84x1xf32> to vector<84x128xf32>
    %14 = arith.addf %11, %13 : vector<84x128xf32>
    %cst_11 = arith.constant 0.000000e+00 : f32
    %15 = vector.broadcast %cst_11 : f32 to vector<84x128xf32>
    %16 = arith.maximumf %14, %15 : vector<84x128xf32>
    %17 = arith.extf %9 : vector<84x128xbf16> to vector<84x128xf32>
    %18 = arith.addf %16, %17 : vector<84x128xf32>
    %19 = arith.truncf %18 : vector<84x128xf32> to vector<84x128xbf16>
    %c0_12 = arith.constant 0 : index
    %c0_13 = arith.constant 0 : index
    %20 = vector.load %arg6[%c0_12, %c0_13] : memref<84x84xbf16, #tpu.memory_space<vmem>>, vector<84x84xbf16>
    %cst_14 = arith.constant dense<0.000000e+00> : vector<84x128xf32>
    %21 = tpu.matmul %20, %19, %cst_14 {dimension_numbers = #tpu.dot_dimension_numbers<[1], [0], [0], [1], [0, 0, 1, 1], [], []>} : vector<84x84xbf16>, vector<84x128xbf16>, vector<84x128xf32> -> vector<84x128xf32>
    %c0_15 = arith.constant 0 : index
    %c0_16 = arith.constant 0 : index
    %22 = vector.load %arg7[%c0_15, %c0_16] : memref<84x1xf32, #tpu.memory_space<vmem>>, vector<84x1xf32>
    %23 = vector.broadcast %22 : vector<84x1xf32> to vector<84x128xf32>
    %24 = arith.addf %21, %23 : vector<84x128xf32>
    %cst_17 = arith.constant 0.000000e+00 : f32
    %25 = vector.broadcast %cst_17 : f32 to vector<84x128xf32>
    %26 = arith.maximumf %24, %25 : vector<84x128xf32>
    %27 = arith.extf %19 : vector<84x128xbf16> to vector<84x128xf32>
    %28 = arith.addf %26, %27 : vector<84x128xf32>
    %29 = arith.truncf %28 : vector<84x128xf32> to vector<84x128xbf16>
    %30 = arith.extf %29 : vector<84x128xbf16> to vector<84x128xf32>
    %c0_18 = arith.constant 0 : index
    %c0_19 = arith.constant 0 : index
    %31 = vector.load %arg8[%c0_18, %c0_19] : memref<84x1xf32, #tpu.memory_space<vmem>>, vector<84x1xf32>
    %32 = vector.broadcast %31 : vector<84x1xf32> to vector<84x128xf32>
    %33 = arith.mulf %30, %32 : vector<84x128xf32>
    %cst_20 = arith.constant dense<0.000000e+00> : vector<128xf32>
    %34 = vector.multi_reduction <add>, %33, %cst_20 [0] : vector<84x128xf32> to vector<128xf32>
    %35 = vector.shape_cast %34 : vector<128xf32> to vector<1x128xf32>
    %c0_21 = arith.constant 0 : index
    %c0_22 = arith.constant 0 : index
    %36 = vector.load %arg9[%c0_21, %c0_22] : memref<1x1xf32, #tpu.memory_space<vmem>>, vector<1x1xf32>
    %37 = vector.broadcast %36 : vector<1x1xf32> to vector<1x128xf32>
    %38 = arith.addf %35, %37 : vector<1x128xf32>
    %c0_23 = arith.constant 0 : index
    %c0_24 = arith.constant 0 : index
    %39 = vector.load %arg10[%c0_23, %c0_24] : memref<1x128xf32, #tpu.memory_space<vmem>>, vector<1x128xf32>
    tpu.vector_store %arg10[%c0_23, %c0_24], %38 {strides = array<i32>} : memref<1x128xf32, #tpu.memory_space<vmem>>, vector<1x128xf32>,
    return
  }
  func.func @transform_0(%arg0: i32) -> (i32, i32) {
    %c0_i32 = arith.constant 0 : i32
    %c0_i32_0 = arith.constant 0 : i32
    return %arg0, %c0_i32 : i32, i32
  }
  func.func @transform_1(%arg0: i32) -> (i32, i32) {
    %c0_i32 = arith.constant 0 : i32
    %c0_i32_0 = arith.constant 0 : i32
    %c0_i32_1 = arith.constant 0 : i32
    return %c0_i32, %c0_i32_0 : i32, i32
  }
  func.func @transform_2(%arg0: i32) -> (i32, i32) {
    %c0_i32 = arith.constant 0 : i32
    %c0_i32_0 = arith.constant 0 : i32
    %c0_i32_1 = arith.constant 0 : i32
    return %c0_i32, %c0_i32_0 : i32, i32
  }
  func.func @transform_3(%arg0: i32) -> (i32, i32) {
    %c0_i32 = arith.constant 0 : i32
    %c0_i32_0 = arith.constant 0 : i32
    %c0_i32_1 = arith.constant 0 : i32
    return %c0_i32, %c0_i32_0 : i32, i32
  }
  func.func @transform_4(%arg0: i32) -> (i32, i32) {
    %c0_i32 = arith.constant 0 : i32
    %c0_i32_0 = arith.constant 0 : i32
    %c0_i32_1 = arith.constant 0 : i32
    return %c0_i32, %c0_i32_0 : i32, i32
  }
  func.func @transform_5(%arg0: i32) -> (i32, i32) {
    %c0_i32 = arith.constant 0 : i32
    %c0_i32_0 = arith.constant 0 : i32
    %c0_i32_1 = arith.constant 0 : i32
    return %c0_i32, %c0_i32_0 : i32, i32
  }
  func.func @transform_6(%arg0: i32) -> (i32, i32) {
    %c0_i32 = arith.constant 0 : i32
    %c0_i32_0 = arith.constant 0 : i32
    %c0_i32_1 = arith.constant 0 : i32
    return %c0_i32, %c0_i32_0 : i32, i32
  }
  func.func @transform_7(%arg0: i32) -> (i32, i32) {
    %c0_i32 = arith.constant 0 : i32
    %c0_i32_0 = arith.constant 0 : i32
    %c0_i32_1 = arith.constant 0 : i32
    return %c0_i32, %c0_i32_0 : i32, i32
  }
  func.func @transform_8(%arg0: i32) -> (i32, i32) {
    %c0_i32 = arith.constant 0 : i32
    %c0_i32_0 = arith.constant 0 : i32
    %c0_i32_1 = arith.constant 0 : i32
    return %c0_i32, %c0_i32_0 : i32, i32
  }
  func.func @transform_9(%arg0: i32) -> (i32, i32) {
    %c0_i32 = arith.constant 0 : i32
    %c0_i32_0 = arith.constant 0 : i32
    return %c0_i32, %arg0 : i32, i32
  }
}

module attributes {stable_mosaic.version = 11 : i64} {
  func.func @_ffw_kernel(%arg0: i32, %arg1: memref<12x128xbf16, #tpu.memory_space<vmem>>, %arg2: memref<84x12xbf16, #tpu.memory_space<vmem>>, %arg3: memref<84x1xf32, #tpu.memory_space<vmem>>, %arg4: memref<84x84xbf16, #tpu.memory_space<vmem>>, %arg5: memref<84x1xf32, #tpu.memory_space<vmem>>, %arg6: memref<84x84xbf16, #tpu.memory_space<vmem>>, %arg7: memref<84x1xf32, #tpu.memory_space<vmem>>, %arg8: memref<84x1xf32, #tpu.memory_space<vmem>>, %arg9: memref<1x1xf32, #tpu.memory_space<vmem>>, %arg10: memref<1x128xf32, #tpu.memory_space<vmem>>) attributes {dimension_semantics = [#tpu.dimension_semantics<parallel>], iteration_bounds = array<i64: 1>, scalar_prefetch = 0 : i64, scratch_operands = 0 : i64, tpu.core_type = #tpu.core_type<tc>, window_params = [{transform_indices = @transform_0, window_bounds = array<i64: 12, 128>}, {pipeline_mode = #tpu.pipeline_mode<synchronous>, transform_indices = @transform_1, window_bounds = array<i64: 84, 12>}, {pipeline_mode = #tpu.pipeline_mode<synchronous>, transform_indices = @transform_2, window_bounds = array<i64: 84, 1>}, {pipeline_mode = #tpu.pipeline_mode<synchronous>, transform_indices = @transform_3, window_bounds = array<i64: 84, 84>}, {pipeline_mode = #tpu.pipeline_mode<synchronous>, transform_indices = @transform_4, window_bounds = array<i64: 84, 1>}, {pipeline_mode = #tpu.pipeline_mode<synchronous>, transform_indices = @transform_5, window_bounds = array<i64: 84, 84>}, {pipeline_mode = #tpu.pipeline_mode<synchronous>, transform_indices = @transform_6, window_bounds = array<i64: 84, 1>}, {pipeline_mode = #tpu.pipeline_mode<synchronous>, transform_indices = @transform_7, window_bounds = array<i64: 84, 1>}, {pipeline_mode = #tpu.pipeline_mode<synchronous>, transform_indices = @transform_8, window_bounds = array<i64: 1, 1>}, {transform_indices = @transform_9, window_bounds = array<i64: 1, 128>}]} {
    %c0 = arith.constant 0 : index
    %c0_0 = arith.constant 0 : index
    %0 = vector.load %arg2[%c0, %c0_0] : memref<84x12xbf16, #tpu.memory_space<vmem>>, vector<84x12xbf16>
    %c0_1 = arith.constant 0 : index
    %c0_2 = arith.constant 0 : index
    %1 = vector.load %arg1[%c0_1, %c0_2] : memref<12x128xbf16, #tpu.memory_space<vmem>>, vector<12x128xbf16>
    %cst = arith.constant dense<0.000000e+00> : vector<84x128xf32>
    %2 = tpu.matmul %0, %1, %cst {dimension_numbers = #tpu.dot_dimension_numbers<[1], [0], [0], [1], [0, 0, 1, 1], [], []>} : vector<84x12xbf16>, vector<12x128xbf16>, vector<84x128xf32> -> vector<84x128xf32>
    %c0_3 = arith.constant 0 : index
    %c0_4 = arith.constant 0 : index
    %3 = vector.load %arg3[%c0_3, %c0_4] : memref<84x1xf32, #tpu.memory_space<vmem>>, vector<84x1xf32>
    %4 = vector.broadcast %3 : vector<84x1xf32> to vector<84x128xf32>
    %5 = arith.addf %2, %4 : vector<84x128xf32>
    %cst_5 = arith.constant 0.000000e+00 : f32
    %6 = vector.broadcast %cst_5 : f32 to vector<84x128xf32>
    %7 = arith.maximumf %5, %6 : vector<84x128xf32>
    %8 = arith.truncf %7 : vector<84x128xf32> to vector<84x128xbf16>
    %c0_6 = arith.constant 0 : index
    %c0_7 = arith.constant 0 : index
    %9 = vector.load %arg4[%c0_6, %c0_7] : memref<84x84xbf16, #tpu.memory_space<vmem>>, vector<84x84xbf16>
    %cst_8 = arith.constant dense<0.000000e+00> : vector<84x128xf32>
    %10 = tpu.matmul %9, %8, %cst_8 {dimension_numbers = #tpu.dot_dimension_numbers<[1], [0], [0], [1], [0, 0, 1, 1], [], []>} : vector<84x84xbf16>, vector<84x128xbf16>, vector<84x128xf32> -> vector<84x128xf32>
    %c0_9 = arith.constant 0 : index
    %c0_10 = arith.constant 0 : index
    %11 = vector.load %arg5[%c0_9, %c0_10] : memref<84x1xf32, #tpu.memory_space<vmem>>, vector<84x1xf32>
    %12 = vector.broadcast %11 : vector<84x1xf32> to vector<84x128xf32>
    %13 = arith.addf %10, %12 : vector<84x128xf32>
    %cst_11 = arith.constant 0.000000e+00 : f32
    %14 = vector.broadcast %cst_11 : f32 to vector<84x128xf32>
    %15 = arith.maximumf %13, %14 : vector<84x128xf32>
    %16 = arith.extf %8 : vector<84x128xbf16> to vector<84x128xf32>
    %17 = arith.addf %15, %16 : vector<84x128xf32>
    %18 = arith.truncf %17 : vector<84x128xf32> to vector<84x128xbf16>
    %c0_12 = arith.constant 0 : index
    %c0_13 = arith.constant 0 : index
    %19 = vector.load %arg6[%c0_12, %c0_13] : memref<84x84xbf16, #tpu.memory_space<vmem>>, vector<84x84xbf16>
    %cst_14 = arith.constant dense<0.000000e+00> : vector<84x128xf32>
    %20 = tpu.matmul %19, %18, %cst_14 {dimension_numbers = #tpu.dot_dimension_numbers<[1], [0], [0], [1], [0, 0, 1, 1], [], []>} : vector<84x84xbf16>, vector<84x128xbf16>, vector<84x128xf32> -> vector<84x128xf32>
    %c0_15 = arith.constant 0 : index
    %c0_16 = arith.constant 0 : index
    %21 = vector.load %arg7[%c0_15, %c0_16] : memref<84x1xf32, #tpu.memory_space<vmem>>, vector<84x1xf32>
    %22 = vector.broadcast %21 : vector<84x1xf32> to vector<84x128xf32>
    %23 = arith.addf %20, %22 : vector<84x128xf32>
    %cst_17 = arith.constant 0.000000e+00 : f32
    %24 = vector.broadcast %cst_17 : f32 to vector<84x128xf32>
    %25 = arith.maximumf %23, %24 : vector<84x128xf32>
    %26 = arith.extf %18 : vector<84x128xbf16> to vector<84x128xf32>
    %27 = arith.addf %25, %26 : vector<84x128xf32>
    %28 = arith.truncf %27 : vector<84x128xf32> to vector<84x128xbf16>
    %29 = arith.extf %28 : vector<84x128xbf16> to vector<84x128xf32>
    %c0_18 = arith.constant 0 : index
    %c0_19 = arith.constant 0 : index
    %30 = vector.load %arg8[%c0_18, %c0_19] : memref<84x1xf32, #tpu.memory_space<vmem>>, vector<84x1xf32>
    %31 = vector.broadcast %30 : vector<84x1xf32> to vector<84x128xf32>
    %32 = arith.mulf %29, %31 : vector<84x128xf32>
    %cst_20 = arith.constant dense<0.000000e+00> : vector<128xf32>
    %33 = vector.multi_reduction <add>, %32, %cst_20 [0] : vector<84x128xf32> to vector<128xf32>
    %34 = vector.shape_cast %33 : vector<128xf32> to vector<1x128xf32>
    %c0_21 = arith.constant 0 : index
    %c0_22 = arith.constant 0 : index
    %35 = vector.load %arg9[%c0_21, %c0_22] : memref<1x1xf32, #tpu.memory_space<vmem>>, vector<1x1xf32>
    %36 = vector.broadcast %35 : vector<1x1xf32> to vector<1x128xf32>
    %37 = arith.addf %34, %36 : vector<1x128xf32>
    %c0_23 = arith.constant 0 : index
    %c0_24 = arith.constant 0 : index
    %38 = vector.load %arg10[%c0_23, %c0_24] : memref<1x128xf32, #tpu.memory_space<vmem>>, vector<1x128xf32>
    tpu.vector_store %arg10[%c0_23, %c0_24], %37 {strides = array<i32>} : memref<1x128xf32, #tpu.memory_space<vmem>>, vector<1x128xf32>,
    return
  }
  func.func @transform_0(%arg0: i32) -> (i32, i32) {
    %c0_i32 = arith.constant 0 : i32
    %c0_i32_0 = arith.constant 0 : i32
    return %c0_i32, %arg0 : i32, i32
  }
  func.func @transform_1(%arg0: i32) -> (i32, i32) {
    %c0_i32 = arith.constant 0 : i32
    %c0_i32_0 = arith.constant 0 : i32
    %c0_i32_1 = arith.constant 0 : i32
    return %c0_i32, %c0_i32_0 : i32, i32
  }
  func.func @transform_2(%arg0: i32) -> (i32, i32) {
    %c0_i32 = arith.constant 0 : i32
    %c0_i32_0 = arith.constant 0 : i32
    %c0_i32_1 = arith.constant 0 : i32
    return %c0_i32, %c0_i32_0 : i32, i32
  }
  func.func @transform_3(%arg0: i32) -> (i32, i32) {
    %c0_i32 = arith.constant 0 : i32
    %c0_i32_0 = arith.constant 0 : i32
    %c0_i32_1 = arith.constant 0 : i32
    return %c0_i32, %c0_i32_0 : i32, i32
  }
  func.func @transform_4(%arg0: i32) -> (i32, i32) {
    %c0_i32 = arith.constant 0 : i32
    %c0_i32_0 = arith.constant 0 : i32
    %c0_i32_1 = arith.constant 0 : i32
    return %c0_i32, %c0_i32_0 : i32, i32
  }
  func.func @transform_5(%arg0: i32) -> (i32, i32) {
    %c0_i32 = arith.constant 0 : i32
    %c0_i32_0 = arith.constant 0 : i32
    %c0_i32_1 = arith.constant 0 : i32
    return %c0_i32, %c0_i32_0 : i32, i32
  }
  func.func @transform_6(%arg0: i32) -> (i32, i32) {
    %c0_i32 = arith.constant 0 : i32
    %c0_i32_0 = arith.constant 0 : i32
    %c0_i32_1 = arith.constant 0 : i32
    return %c0_i32, %c0_i32_0 : i32, i32
  }
  func.func @transform_7(%arg0: i32) -> (i32, i32) {
    %c0_i32 = arith.constant 0 : i32
    %c0_i32_0 = arith.constant 0 : i32
    %c0_i32_1 = arith.constant 0 : i32
    return %c0_i32, %c0_i32_0 : i32, i32
  }
  func.func @transform_8(%arg0: i32) -> (i32, i32) {
    %c0_i32 = arith.constant 0 : i32
    %c0_i32_0 = arith.constant 0 : i32
    %c0_i32_1 = arith.constant 0 : i32
    return %c0_i32, %c0_i32_0 : i32, i32
  }
  func.func @transform_9(%arg0: i32) -> (i32, i32) {
    %c0_i32 = arith.constant 0 : i32
    %c0_i32_0 = arith.constant 0 : i32
    return %c0_i32, %arg0 : i32, i32
  }
}

</mosaic_0001>

<bundles_post_ra>
// kernel: _ffw_impl.1
= control target key start
LH: loop header
LB: loop body
LE: loop exit
PB: predicated region body
PF: predicated region fallthrough
CT: control target
= control target key end

     0   :  { %vm164_vm0 = vcmask 97280   ;;  %v975_v2 = vmov 0   ;;  %vm424_vm1 = vcmask 1041408   ;;  %vm405_vm2 = vcmask 687104   ;;  %s1394_s0 = inlined_call_operand.vmem [shape: f32[128,12], index: 0, kind: input, shape index: {}]   ;;  %s1395_s2 = inlined_call_operand.vmem [shape: f32[84,1], index: 2, kind: input, shape index: {}]   ;;  %s1396_s4 = inlined_call_operand.vmem [shape: f32[84,1], index: 4, kind: input, shape index: {}]   ;;  %s1397_s6 = inlined_call_operand.vmem [shape: f32[84,1], index: 6, kind: input, shape index: {}]   ;;  %s1398_s1 = inlined_call_operand.vmem [shape: bf16[84,12], index: 1, kind: input, shape index: {}]   ;;  %s1399_s7 = inlined_call_operand.vmem [shape: f32[84,1], index: 7, kind: input, shape index: {}]   ;;  %s1400_s8 = inlined_call_operand.<no memory space> [shape: f32[1,1], index: 8, kind: input, shape index: {}]   ;;  %s1401_s3 = inlined_call_operand.vmem [shape: bf16[84,84], index: 3, kind: input, shape index: {}]   ;;  %s1402_s5 = inlined_call_operand.vmem [shape: bf16[84,84], index: 5, kind: input, shape index: {}]   ;;  %s1403_s9 = inlined_call_operand.vmem [shape: f32[1,128], index: 9, kind: output, shape index: {}]  }
   0x1   :  { %v49_v0 = vld [vmem:[%s1394_s0 + $0x70] sm:$0xff]  ;;  %v50_v1 = vld [vmem:[%s1394_s0 + $0x78] sm:$0xff]  ;;  %973 = vset.pattern.permute.xlu1 %v975_v2  ;;  %972 = vset.pattern.permute.xlu0 %v975_v2  ;;  %v79_v5 = vld [vmem:[%s1395_s2 + $0x48] sm:$0xff]  ;;  %vm848_vm3 = vcmask 1043456  }
   0x2   :  { %v80_v3 = vld [vmem:[%s1395_s2 + $0x50] sm:$0xf]  ;;  %v58_v4 = vpack.c.bf16 %v50_v1, %v49_v0  ;;  %974 = vset.pattern.permute.xlu2 %v975_v2  ;;  %128 = vperm.xlu1 %973, %v79_v5   ;;  %v47_v6 = vld [vmem:[%s1394_s0 + $0x60] sm:$0xff]  ;;  %v48_v7 = vld [vmem:[%s1394_s0 + $0x68] sm:$0xff] }
   0x3   :  { %133 = vperm.xlu0 %972, %v80_v3   ;;  %v57_v9 = vpack.c.bf16 %v48_v7, %v47_v6  ;;  %v78_v10 = vld [vmem:[%s1395_s2 + $0x40] sm:$0xff]  ;;  %v77_v11 = vld [vmem:[%s1395_s2 + $0x38] sm:$0xff]  ;;  %v76_v12 = vld [vmem:[%s1395_s2 + $0x30] sm:$0xff] }
   0x4   :  { %v205_v8 = vsel %vm164_vm0, %v58_v4, 0  ;;  %118 = vperm.xlu2 %974, %v77_v11   ;;  %v45_v14 = vld [vmem:[%s1394_s0 + $0x50] sm:$0xff]  ;;  %v46_v15 = vld [vmem:[%s1394_s0 + $0x58] sm:$0xff]  ;;  %v74_v16 = vld [vmem:[%s1395_s2 + $0x20] sm:$0xff] }
   0x5   :  { %207 = vmatpush.bf16.xpose.msra.mxu0 %v205_v8  ;;  %963 = vmatpush.bf16.xpose.msra.mxu3 %v205_v8  ;;  %v202_v13 = vsel %vm164_vm0, %v57_v9, 0  ;;  %v56_v17 = vpack.c.bf16 %v46_v15, %v45_v14  ;;  %v75_v18 = vld [vmem:[%s1395_s2 + $0x28] sm:$0xff]  ;;  %v72_v19 = vld [vmem:[%s1395_s2 + $0x10] sm:$0xff]  ;;  %v43_v21 = vld [vmem:[%s1394_s0 + $0x40] sm:$0xff] }
   0x6   :  { %v44_v22 = vld [vmem:[%s1394_s0 + $0x48] sm:$0xff]  ;;  %v73_v23 = vld [vmem:[%s1395_s2 + $0x18] sm:$0xff]  ;;  %v70_v25 = vld [vmem:[%s1395_s2] sm:$0xff] }
   0x7   :  { %v199_v20 = vsel %vm164_vm0, %v56_v17, 0  ;;  %v55_v24 = vpack.c.bf16 %v44_v22, %v43_v21  ;;  %v71_v26 = vld [vmem:[%s1395_s2 + $0x8] sm:$0xff]  ;;  %v41_v28 = vld [vmem:[%s1394_s0 + $0x30] sm:$0xff]  ;;  %v42_v29 = vld [vmem:[%s1394_s0 + $0x38] sm:$0xff] }
   0x8   :  { %v288_v30 = vld [vmem:[%s1396_s4 + $0x50] sm:$0xf]  ;;  %v54_v31 = vpack.c.bf16 %v42_v29, %v41_v28  ;;  %v286_v32 = vld [vmem:[%s1396_s4 + $0x40] sm:$0xff]  ;;  %v287_v33 = vld [vmem:[%s1396_s4 + $0x48] sm:$0xff] }
   0x9   :  { %v196_v27 = vsel %vm164_vm0, %v55_v24, 0  ;;  %v39_v35 = vld [vmem:[%s1394_s0 + $0x20] sm:$0xff]  ;;  %v40_v36 = vld [vmem:[%s1394_s0 + $0x28] sm:$0xff]  ;;  %v284_v37 = vld [vmem:[%s1396_s4 + $0x30] sm:$0xff] }
   0xa   :  { %113 = vperm.xlu1 %973, %v76_v12   ;;  %v193_v34 = vsel %vm164_vm0, %v54_v31, 0  ;;  %v53_v38 = vpack.c.bf16 %v40_v36, %v39_v35  ;;  %v285_v39 = vld [vmem:[%s1396_s4 + $0x38] sm:$0xff]  ;;  %v282_v40 = vld [vmem:[%s1396_s4 + $0x20] sm:$0xff]  ;;  %v37_v42 = vld [vmem:[%s1394_s0 + $0x10] sm:$0xff] }
   0xb   :  { %123 = vperm.xlu0 %972, %v78_v10   ;;  %v38_v43 = vld [vmem:[%s1394_s0 + $0x18] sm:$0xff]  ;;  %v283_v44 = vld [vmem:[%s1396_s4 + $0x28] sm:$0xff]  ;;  %v280_v46 = vld [vmem:[%s1396_s4 + $0x10] sm:$0xff] }
   0xc   :  { %103 = vperm.xlu2 %974, %v74_v16   ;;  %v190_v41 = vsel %vm164_vm0, %v53_v38, 0  ;;  %v52_v45 = vpack.c.bf16 %v38_v43, %v37_v42  ;;  %v281_v47 = vld [vmem:[%s1396_s4 + $0x18] sm:$0xff]  ;;  %v35_v49 = vld [vmem:[%s1394_s0] sm:$0xff]  ;;  %v36_v50 = vld [vmem:[%s1394_s0 + $0x8] sm:$0xff] }
   0xd   :  { %208 = vmatpush.bf16.xpose.msra.mxu0 %v202_v13  ;;  %964 = vmatpush.bf16.xpose.msra.mxu3 %v202_v13  ;;  %v278_v51 = vld [vmem:[%s1396_s4] sm:$0xff]  ;;  %v51_v52 = vpack.c.bf16 %v36_v50, %v35_v49  ;;  %v279_v53 = vld [vmem:[%s1396_s4 + $0x8] sm:$0xff]  ;;  %v523_v57 = vld [vmem:[%s1397_s6 + $0x10] sm:$0xff] }
   0xe   :  { %v187_v48 = vsel %vm164_vm0, %v52_v45, 0  ;;  %v521_v54 = vld [vmem:[%s1397_s6] sm:$0xff]  ;;  %v522_v56 = vld [vmem:[%s1397_s6 + $0x8] sm:$0xff]  ;;  %v524_v60 = vld [vmem:[%s1397_s6 + $0x18] sm:$0xff] }
   0xf   :  { %v184_v55 = vsel %vm164_vm0, %v51_v52, 0  ;;  %v948_v58 = vld [vmem:[%s1398_s1] sm:$0xff]  ;;  %v526_v62 = vld [vmem:[%s1397_s6 + $0x28] sm:$0xff]  ;;  %v527_v63 = vld [vmem:[%s1397_s6 + $0x30] sm:$0xff] }
  0x10   :  { %v952_v59 = vld [vmem:[%s1398_s1 + $0x20] sm:$0xff]  ;;  %v69_v0 = vld [vmem:[%s1398_s1 + $0x28] sm:$0x3]  ;;  %v528_v2 = vld [vmem:[%s1397_s6 + $0x38] sm:$0xff] }
  0x11   :  { %v525_v61 = vld [vmem:[%s1397_s6 + $0x20] sm:$0xff]  ;;  %v157_v1 = vunpack.c.l.b16 %v69_v0  ;;  %v949_v4 = vld [vmem:[%s1398_s1 + $0x8] sm:$0xff]  ;;  %v531_v7 = vld [vmem:[%s1397_s6 + $0x50] sm:$0xf] }
  0x12   :  { %93 = vperm.xlu1 %973, %v72_v19   ;;  %v529_v3 = vld [vmem:[%s1397_s6 + $0x40] sm:$0xff]  ;;  %v530_v6 = vld [vmem:[%s1397_s6 + $0x48] sm:$0xff]  ;;  %v764_v10 = vld [vmem:[%s1399_s7 + $0x10] sm:$0xff] }
  0x13   :  { %108 = vperm.xlu0 %972, %v75_v18   ;;  %v163_v5 = vpack.c.b16 %v157_v1, %v157_v1  ;;  %v762_v8 = vld [vmem:[%s1399_s7] sm:$0xff]  ;;  %v763_v9 = vld [vmem:[%s1399_s7 + $0x8] sm:$0xff]  ;;  %v765_v11 = vld [vmem:[%s1399_s7 + $0x18] sm:$0xff]  ;;  %v14_v18 = vstv %s1400_s8 }
  0x14   :  { %98 = vperm.xlu2 %974, %v73_v23   ;;  %v950_v12 = vld [vmem:[%s1398_s1 + $0x10] sm:$0xff]  ;;  %v766_v13 = vld [vmem:[%s1399_s7 + $0x20] sm:$0xff]  ;;  %v767_v14 = vld [vmem:[%s1399_s7 + $0x28] sm:$0xff]  ;;  %15 = vst [vmem:[#allocation2] sm:$0x1] %v14_v18 }
  0x15   :  { %209 = vmatpush.bf16.xpose.msra.mxu0 %v199_v20  ;;  %965 = vmatpush.bf16.xpose.msra.mxu3 %v199_v20  ;;  %v768_v15 = vld [vmem:[%s1399_s7 + $0x30] sm:$0xff]  ;;  %v769_v16 = vld [vmem:[%s1399_s7 + $0x38] sm:$0xff]  ;;  %v770_v17 = vld [vmem:[%s1399_s7 + $0x40] sm:$0xff] }
  0x16   :  { %v771_v19 = vld [vmem:[%s1399_s7 + $0x48] sm:$0xff]  ;;  %v951_v20 = vld [vmem:[%s1398_s1 + $0x18] sm:$0xff]  ;;  %v772_v21 = vld [vmem:[%s1399_s7 + $0x50] sm:$0xf] }
  0x1a   :  { %88 = vperm.xlu1 %973, %v71_v26  }
  0x1b   :  { %83 = vperm.xlu0 %972, %v70_v25   ;;  %v857_v22 = vld [vmem:[#allocation2] sm:$0x1] }
  0x1c   :  { %341 = vperm.xlu2 %974, %v288_v30  }
  0x1d   :  { %210 = vmatpush.bf16.xpose.msra.mxu0 %v196_v27  ;;  %966 = vmatpush.bf16.xpose.msra.mxu3 %v196_v27 }
  0x22   :  { %336 = vperm.xlu1 %973, %v287_v33  }
  0x23   :  { %331 = vperm.xlu0 %972, %v286_v32  }
  0x24   :  { %321 = vperm.xlu2 %974, %v284_v37  }
  0x25   :  { %211 = vmatpush.bf16.xpose.msra.mxu0 %v193_v34  ;;  %967 = vmatpush.bf16.xpose.msra.mxu3 %v193_v34 }
  0x2a   :  { %311 = vperm.xlu1 %973, %v282_v40  }
  0x2b   :  { %326 = vperm.xlu0 %972, %v285_v39  }
  0x2c   :  { %316 = vperm.xlu2 %974, %v283_v44  }
  0x2d   :  { %212 = vmatpush.bf16.xpose.msra.mxu0 %v190_v41  ;;  %968 = vmatpush.bf16.xpose.msra.mxu3 %v190_v41 }
  0x32   :  { %306 = vperm.xlu1 %973, %v281_v47  }
  0x33   :  { %301 = vperm.xlu0 %972, %v280_v46  }
  0x34   :  { %291 = vperm.xlu2 %974, %v278_v51  }
  0x35   :  { %213 = vmatpush.bf16.xpose.msra.mxu0 %v187_v48  ;;  %969 = vmatpush.bf16.xpose.msra.mxu3 %v187_v48 }
  0x3a   :  { %534 = vperm.xlu1 %973, %v521_v54  }
  0x3b   :  { %296 = vperm.xlu0 %972, %v279_v53  }
  0x3c   :  { %539 = vperm.xlu2 %974, %v522_v56  }
  0x3d   :  { %214 = vmatpush.bf16.xpose.msra.mxu0 %v184_v55  ;;  %970 = vmatpush.bf16.xpose.msra.mxu3 %v184_v55 }
  0x42   :  { %549 = vperm.xlu1 %973, %v524_v60  }
  0x43   :  { %544 = vperm.xlu0 %972, %v523_v57  }
  0x44   :  { %890 = vmatmul.msk.bf16.vlgmr.msra.gmra.mxu0 %vm164_vm0, %v948_v58  ;;  %894 = vmatmul.msk.bf16.vlgmr.msra.gmra.mxu3 %vm164_vm0, %v952_v59 }
  0x45   :  { %554 = vperm.xlu2 %974, %v525_v61  }
  0x4a   :  { %564 = vperm.xlu1 %973, %v527_v63  }
  0x4b   :  { %559 = vperm.xlu0 %972, %v526_v62  }
  0x4d   :  { %569 = vperm.xlu2 %974, %v528_v2  }
  0x52   :  { %579 = vperm.xlu1 %973, %v530_v6  }
  0x53   :  { %574 = vperm.xlu0 %972, %v529_v3  }
  0x54   :  { %891 = vmatmul.msk.bf16.gmra.mxu0 %vm164_vm0, %v949_v4  ;;  %895 = vmatmul.msk.bf16.gmra.mxu3 %vm164_vm0, %v163_v5 }
  0x55   :  { %584 = vperm.xlu2 %974, %v531_v7  }
  0x5a   :  { %780 = vperm.xlu1 %973, %v763_v9  }
  0x5b   :  { %775 = vperm.xlu0 %972, %v762_v8  }
  0x5d   :  { %785 = vperm.xlu2 %974, %v764_v10  }
  0x5e   :  { %v119_v50 = vpop.permute.xlu2 %118 }
  0x62   :  { %795 = vperm.xlu1 %973, %v766_v13  }
  0x63   :  { %790 = vperm.xlu0 %972, %v765_v11  }
  0x64   :  { %892 = vmatmul.msk.bf16.gmra.mxu0 %vm164_vm0, %v950_v12 }
  0x65   :  { %800 = vperm.xlu2 %974, %v767_v14  }
  0x66   :  { %v104_v53 = vpop.permute.xlu2 %103 }
  0x6a   :  { %810 = vperm.xlu1 %973, %v769_v16  }
  0x6b   :  { %805 = vperm.xlu0 %972, %v768_v15  }
  0x6d   :  { %815 = vperm.xlu2 %974, %v770_v17  }
  0x6e   :  { %v99_v61 = vpop.permute.xlu2 %98 }
  0x72   :  { %825 = vperm.xlu1 %973, %v772_v21  }
  0x73   :  { %820 = vperm.xlu0 %972, %v771_v19  }
  0x74   :  { %893 = vmatmul.msk.bf16.gmra.mxu0 %vm164_vm0, %v951_v20  ;;  %v129_v29 = vpop.permute.xlu1 %128 }
  0x75   :  { %860 = vperm.xlu2 %974, %v857_v22   ;;  %v134_v25 = vpop.permute.xlu0 %133 }
  0x7c   :  { %v114_v51 = vpop.permute.xlu1 %113 }
  0x7d   :  { %v124_v30 = vpop.permute.xlu0 %123 }
  0x84   :  { %v94_v55 = vpop.permute.xlu1 %93 }
  0x85   :  { %v109_v56 = vpop.permute.xlu0 %108 }
  0x8c   :  { %v89_v6 = vpop.permute.xlu1 %88 }
  0x8d   :  { %v84_v7 = vpop.permute.xlu0 %83 }
  0xc1   :  { %v216_v23 = vpop.f32.mrf.mxu0 }
  0xc2   :  { %v217_v12 = vadd.f32 %v216_v23, %v84_v7 }
  0xc4   :  { %v245_v21 = vmax.f32 %v217_v12, 0.0 }
  0xc7   :  { %v236_v24 = vpop.f32.mrf.mxu3 }
  0xc8   :  { %v237_v31 = vadd.f32 %v236_v24, %v124_v30 }
  0xc9   :  { %v218_v26 = vpop.f32.mrf.mxu0 }
  0xca   :  { %v253_v33 = vmax.f32 %v237_v31, 0.0  ;;  %v219_v8 = vadd.f32 %v218_v26, %v89_v6 }
  0xcc   :  { %v1241_v39 = vpack.c.bf16 %v253_v33, %v253_v33  ;;  %v246_v17 = vmax.f32 %v219_v8, 0.0  ;;  %v953_v33 = vld [vmem:[%s1401_s3] sm:$0xff] }
  0xce   :  { %v391_v43 = vunpack.c.l.b16 %v1241_v39 }
  0xcf   :  { %v238_v27 = vpop.f32.mrf.mxu3 }
  0xd0   :  { %v239_v32 = vadd.f32 %v238_v27, %v129_v29  ;;  %v256_v27 = vpack.c.bf16 %v245_v21, %v245_v21 }
  0xd1   :  { %v221_v28 = vpop.f32.mrf.mxu0 }
  0xd2   :  { %v254_v34 = vmax.f32 %v239_v32, 0.0  ;;  %v222_v2 = vadd.f32 %v221_v28, %v94_v55  ;;  %v383_v31 = vunpack.c.l.b16 %v256_v27  ;;  %v1294_v55 = vpop.permute.xlu1 %336 }
  0xd4   :  { %v1243_v40 = vpack.c.bf16 %v254_v34, %v254_v34  ;;  %v247_v13 = vmax.f32 %v222_v2, 0.0  ;;  %v954_v34 = vld [vmem:[%s1401_s3 + $0x8] sm:$0xff] }
  0xd6   :  { %v392_v44 = vunpack.c.l.b16 %v1243_v40  ;;  %v258_v22 = vpack.c.bf16 %v247_v13, %v247_v13 }
  0xd7   :  { %v241_v35 = vpop.f32.mrf.mxu3 }
  0xd8   :  { %v242_v36 = vadd.f32 %v241_v35, %v134_v25  ;;  %v398_v49 = vpack.c.b16 %v392_v44, %v391_v43  ;;  %v257_v25 = vpack.c.bf16 %v246_v17, %v246_v17  ;;  %v385_v28 = vunpack.c.l.b16 %v258_v22  ;;  %v955_v35 = vld [vmem:[%s1401_s3 + $0x10] sm:$0xff]  ;;  %v1290_v44 = vpop.permute.xlu2 %341 }
  0xd9   :  { %v223_v37 = vpop.f32.mrf.mxu0  ;;  %v479_v7 = vunpack.c.l.bf16 %v258_v22 }
  0xda   :  { %v255_v38 = vmax.f32 %v242_v36, 0.0  ;;  %v224_v63 = vadd.f32 %v223_v37, %v99_v61  ;;  %v384_v30 = vunpack.c.l.b16 %v257_v25  ;;  %v956_v36 = vld [vmem:[%s1401_s3 + $0x18] sm:$0xff]  ;;  %v957_v37 = vld [vmem:[%s1401_s3 + $0x20] sm:$0xff] }
  0xdc   :  { %v1245_v41 = vpack.c.bf16 %v255_v38, %v255_v38  ;;  %v248_v9 = vmax.f32 %v224_v63, 0.0  ;;  %v394_v32 = vpack.c.b16 %v384_v30, %v383_v31  ;;  %v277_v38 = vld [vmem:[%s1401_s3 + $0x28] sm:$0x3] }
  0xde   :  { %v393_v42 = vunpack.c.l.b16 %v1245_v41  ;;  %v1261_v18 = vpack.c.bf16 %v248_v9, %v248_v9 }
  0xdf   :  { %v243_v45 = vpop.f32.mrf.mxu3 }
  0xe0   :  { %v399_v46 = vpack.c.b16 %v393_v42, %v393_v42  ;;  %v386_v26 = vunpack.c.l.b16 %v1261_v18  ;;  %v365_v42 = vunpack.c.l.b16 %v277_v38  ;;  %v1292_v45 = vpop.permute.xlu0 %331  ;;  %v480_v17 = vunpack.c.l.bf16 %v1261_v18 }
  0xe1   :  { %v226_v47 = vpop.f32.mrf.mxu0 }
  0xe2   :  { %v426_v48 = vsel %vm424_vm1, %v399_v46, 0  ;;  %v227_v59 = vadd.f32 %v226_v47, %v104_v53  ;;  %v395_v29 = vpack.c.b16 %v386_v26, %v385_v28  ;;  %v371_v43 = vpack.c.b16 %v365_v42, %v365_v42  ;;  %v322_v46 = vpop.permute.xlu2 %321 }
  0xe3   :  { %430 = vmatpush.bf16.msra.mxu1 %v426_v48  ;;  %v477_v53 = vunpack.c.l.bf16 %v256_v27 }
  0xe4   :  { %v249_v3 = vmax.f32 %v227_v59, 0.0 }
  0xe6   :  { %v1257_v14 = vpack.c.bf16 %v249_v3, %v249_v3 }
  0xe7   :  { %431 = vmatpush.bf16.msra.mxu1 %v398_v49 }
  0xe8   :  { %v387_v24 = vunpack.c.l.b16 %v1257_v14  ;;  %v327_v47 = vpop.permute.xlu0 %326 }
  0xe9   :  { %v228_v52 = vpop.f32.mrf.mxu0 }
  0xea   :  { %v229_v58 = vadd.f32 %v228_v52, %v109_v56  ;;  %v317_v48 = vpop.permute.xlu2 %316 }
  0xec   :  { %v250_v0 = vmax.f32 %v229_v58, 0.0 }
  0xee   :  { %v1253_v10 = vpack.c.bf16 %v250_v0, %v250_v0  ;;  %v312_v0 = vpop.permute.xlu1 %311 }
  0xf0   :  { %v388_v20 = vunpack.c.l.b16 %v1253_v10  ;;  %v302_v49 = vpop.permute.xlu0 %301  ;;  %v482_v18 = vunpack.c.l.bf16 %v1253_v10 }
  0xf1   :  { %v231_v54 = vpop.f32.mrf.mxu0 }
  0xf2   :  { %v232_v57 = vadd.f32 %v231_v54, %v114_v51  ;;  %v396_v23 = vpack.c.b16 %v388_v20, %v387_v24 }
  0xf4   :  { %v251_v60 = vmax.f32 %v232_v57, 0.0 }
  0xf6   :  { %v1251_v4 = vpack.c.bf16 %v251_v60, %v251_v60  ;;  %v478_v60 = vunpack.c.l.bf16 %v257_v25  ;;  %v307_v13 = vpop.permute.xlu1 %306 }
  0xf8   :  { %v389_v15 = vunpack.c.l.b16 %v1251_v4  ;;  %v297_v57 = vpop.permute.xlu0 %296 }
  0xf9   :  { %v233_v62 = vpop.f32.mrf.mxu0 }
  0xfa   :  { %v234_v1 = vadd.f32 %v233_v62, %v119_v50  ;;  %v292_v50 = vpop.permute.xlu2 %291 }
  0xfc   :  { %v252_v5 = vmax.f32 %v234_v1, 0.0 }
  0xfe   :  { %v1255_v11 = vpack.c.bf16 %v252_v5, %v252_v5 }
 0x100   :  { %v390_v16 = vunpack.c.l.b16 %v1255_v11  ;;  %v484_v10 = vunpack.c.l.bf16 %v1255_v11 }
 0x102   :  { %v397_v19 = vpack.c.b16 %v390_v16, %v389_v15 }
 0x104   :  { %432 = vmatpush.bf16.msra.mxu1 %v397_v19 }
 0x108   :  { %433 = vmatpush.bf16.msra.mxu1 %v396_v23 }
 0x10c   :  { %434 = vmatpush.bf16.msra.mxu1 %v395_v29  ;;  %v481_v29 = vunpack.c.l.bf16 %v1257_v14  ;;  %v483_v14 = vunpack.c.l.bf16 %v1251_v4 }
 0x110   :  { %435 = vmatpush.bf16.msra.mxu1 %v394_v32 }
 0x113   :  { %916 = vmatmul.msk.bf16.vlgmr.msra.gmra.mxu1 %vm405_vm2, %v953_v33 }
 0x123   :  { %917 = vmatmul.msk.bf16.gmra.mxu1 %vm405_vm2, %v954_v34 }
 0x133   :  { %918 = vmatmul.msk.bf16.gmra.mxu1 %vm405_vm2, %v955_v35 }
 0x143   :  { %919 = vmatmul.msk.bf16.gmra.mxu1 %vm405_vm2, %v956_v36 }
 0x153   :  { %920 = vmatmul.msk.bf16.gmra.mxu1 %vm405_vm2, %v957_v37 }
 0x163   :  { %921 = vmatmul.msk.bf16.gmra.mxu1 %vm405_vm2, %v371_v43 }
 0x190   :  { %v437_v51 = vpop.f32.mrf.mxu1 }
 0x191   :  { %v438_v52 = vadd.f32 %v437_v51, %v292_v50 }
 0x193   :  { %v466_v54 = vmax.f32 %v438_v52, 0.0 }
 0x195   :  { %v488_v56 = vadd.f32 %v477_v53, %v466_v54 }
 0x197   :  { %v1296_v62 = vpack.c.bf16 %v488_v56, %v488_v56 }
 0x198   :  { %v439_v58 = vpop.f32.mrf.mxu1 }
 0x199   :  { %v440_v59 = vadd.f32 %v439_v58, %v297_v57  ;;  %v626_v5 = vunpack.c.l.b16 %v1296_v62 }
 0x19b   :  { %v467_v61 = vmax.f32 %v440_v59, 0.0 }
 0x19d   :  { %v489_v63 = vadd.f32 %v478_v60, %v467_v61 }
 0x19f   :  { %v1298_v1 = vpack.c.bf16 %v489_v63, %v489_v63  ;;  %v485_v63 = vunpack.c.l.bf16 %v1241_v39  ;;  %v487_v39 = vunpack.c.l.bf16 %v1245_v41  ;;  %v958_v41 = vld [vmem:[%s1402_s5] sm:$0xff] }
 0x1a0   :  { %v442_v2 = vpop.f32.mrf.mxu1 }
 0x1a1   :  { %v443_v3 = vadd.f32 %v442_v2, %v302_v49  ;;  %v627_v6 = vunpack.c.l.b16 %v1298_v1  ;;  %v486_v2 = vunpack.c.l.bf16 %v1243_v40 }
 0x1a3   :  { %v468_v8 = vmax.f32 %v443_v3, 0.0  ;;  %v1302_v9 = vpack.c.b16 %v627_v6, %v626_v5 }
 0x1a5   :  { %v490_v12 = vadd.f32 %v479_v7, %v468_v8 }
 0x1a7   :  { %v1305_v20 = vpack.c.bf16 %v490_v12, %v490_v12 }
 0x1a8   :  { %v444_v15 = vpop.f32.mrf.mxu1 }
 0x1a9   :  { %v445_v16 = vadd.f32 %v444_v15, %v307_v13  ;;  %v628_v26 = vunpack.c.l.b16 %v1305_v20 }
 0x1ab   :  { %v469_v19 = vmax.f32 %v445_v16, 0.0 }
 0x1ad   :  { %v491_v21 = vadd.f32 %v480_v17, %v469_v19 }
 0x1af   :  { %v1307_v24 = vpack.c.bf16 %v491_v21, %v491_v21 }
 0x1b0   :  { %v447_v25 = vpop.f32.mrf.mxu1 }
 0x1b1   :  { %v448_v23 = vadd.f32 %v447_v25, %v312_v0  ;;  %v629_v22 = vunpack.c.l.b16 %v1307_v24 }
 0x1b3   :  { %v638_v27 = vpack.c.b16 %v629_v22, %v628_v26  ;;  %v470_v28 = vmax.f32 %v448_v23, 0.0  ;;  %v960_v23 = vld [vmem:[%s1402_s5 + $0x10] sm:$0xff]  ;;  %v961_v26 = vld [vmem:[%s1402_s5 + $0x18] sm:$0xff]  ;;  %v520_v22 = vld [vmem:[%s1402_s5 + $0x28] sm:$0x3] }
 0x1b5   :  { %v492_v31 = vadd.f32 %v481_v29, %v470_v28  ;;  %v535_v29 = vpop.permute.xlu1 %534 }
 0x1b7   :  { %v1313_v34 = vpack.c.bf16 %v492_v31, %v492_v31  ;;  %v545_v31 = vpop.permute.xlu0 %544 }
 0x1b8   :  { %v449_v30 = vpop.f32.mrf.mxu1 }
 0x1b9   :  { %v450_v32 = vadd.f32 %v449_v30, %v317_v48  ;;  %v630_v42 = vunpack.c.l.b16 %v1313_v34  ;;  %v540_v30 = vpop.permute.xlu2 %539 }
 0x1bb   :  { %v471_v33 = vmax.f32 %v450_v32, 0.0 }
 0x1bd   :  { %v493_v35 = vadd.f32 %v482_v18, %v471_v33  ;;  %v550_v32 = vpop.permute.xlu1 %549 }
 0x1bf   :  { %v1315_v36 = vpack.c.bf16 %v493_v35, %v493_v35  ;;  %v560_v33 = vpop.permute.xlu0 %559 }
 0x1c0   :  { %v452_v37 = vpop.f32.mrf.mxu1 }
 0x1c1   :  { %v453_v38 = vadd.f32 %v452_v37, %v322_v46  ;;  %v631_v43 = vunpack.c.l.b16 %v1315_v36  ;;  %v555_v18 = vpop.permute.xlu2 %554 }
 0x1c3   :  { %v639_v49 = vpack.c.b16 %v631_v43, %v630_v42  ;;  %v472_v50 = vmax.f32 %v453_v38, 0.0  ;;  %v718_v43 = vunpack.c.l.bf16 %v1296_v62 }
 0x1c5   :  { %v494_v48 = vadd.f32 %v483_v14, %v472_v50  ;;  %v565_v35 = vpop.permute.xlu1 %564 }
 0x1c7   :  { %v1321_v54 = vpack.c.bf16 %v494_v48, %v494_v48  ;;  %v1371_v50 = vpop.permute.xlu0 %574 }
 0x1c8   :  { %v454_v51 = vpop.f32.mrf.mxu1 }
 0x1c9   :  { %v455_v52 = vadd.f32 %v454_v51, %v327_v47  ;;  %v632_v59 = vunpack.c.l.b16 %v1321_v54 }
 0x1cb   :  { %v473_v53 = vmax.f32 %v455_v52, 0.0 }
 0x1cd   :  { %v495_v56 = vadd.f32 %v484_v10, %v473_v53  ;;  %v1373_v51 = vpop.permute.xlu1 %579 }
 0x1cf   :  { %v1323_v57 = vpack.c.bf16 %v495_v56, %v495_v56  ;;  %v719_v56 = vunpack.c.l.bf16 %v1298_v1 }
 0x1d0   :  { %v457_v46 = vpop.f32.mrf.mxu1 }
 0x1d1   :  { %v458_v58 = vadd.f32 %v457_v46, %v1292_v45  ;;  %v633_v60 = vunpack.c.l.b16 %v1323_v57 }
 0x1d3   :  { %v640_v61 = vpack.c.b16 %v633_v60, %v632_v59  ;;  %v474_v4 = vmax.f32 %v458_v58, 0.0 }
 0x1d5   :  { %v496_v0 = vadd.f32 %v485_v63, %v474_v4  ;;  %v781_v63 = vpop.permute.xlu1 %780 }
 0x1d7   :  { %v1331_v5 = vpack.c.bf16 %v496_v0, %v496_v0 }
 0x1d8   :  { %v459_v47 = vpop.f32.mrf.mxu1 }
 0x1d9   :  { %v460_v11 = vadd.f32 %v459_v47, %v1294_v55  ;;  %v634_v12 = vunpack.c.l.b16 %v1331_v5  ;;  %v776_v47 = vpop.permute.xlu0 %775 }
 0x1db   :  { %v475_v3 = vmax.f32 %v460_v11, 0.0 }
 0x1dd   :  { %v497_v6 = vadd.f32 %v486_v2, %v475_v3  ;;  %v720_v3 = vunpack.c.l.bf16 %v1305_v20 }
 0x1df   :  { %v1333_v7 = vpack.c.bf16 %v497_v6, %v497_v6 }
 0x1e0   :  { %v462_v45 = vpop.f32.mrf.mxu1 }
 0x1e1   :  { %v463_v8 = vadd.f32 %v462_v45, %v1290_v44  ;;  %v635_v13 = vunpack.c.l.b16 %v1333_v7  ;;  %v959_v44 = vld [vmem:[%s1402_s5 + $0x8] sm:$0xff] }
 0x1e3   :  { %v476_v15 = vmax.f32 %v463_v8, 0.0  ;;  %v641_v16 = vpack.c.b16 %v635_v13, %v634_v12 }
 0x1e5   :  { %v498_v55 = vadd.f32 %v487_v39, %v476_v15 }
 0x1e7   :  { %v1339_v17 = vpack.c.bf16 %v498_v55, %v498_v55  ;;  %v721_v55 = vunpack.c.l.bf16 %v1307_v24 }
 0x1e8   :  { %v464_v40 = vpop.f32.mrf.mxu1 }
 0x1e9   :  { %v636_v19 = vunpack.c.l.b16 %v1339_v17 }
 0x1eb   :  { %v642_v21 = vpack.c.b16 %v636_v19, %v636_v19 }
 0x1ed   :  { %v667_v25 = vsel %vm424_vm1, %v642_v21, 0 }
 0x1ee   :  { %671 = vmatpush.bf16.msra.mxu2 %v667_v25 }
 0x1f2   :  { %672 = vmatpush.bf16.msra.mxu2 %v641_v16 }
 0x1f6   :  { %673 = vmatpush.bf16.msra.mxu2 %v640_v61 }
 0x1fa   :  { %674 = vmatpush.bf16.msra.mxu2 %v639_v49  ;;  %v1369_v49 = vpop.permute.xlu2 %569 }
 0x1fe   :  { %675 = vmatpush.bf16.msra.mxu2 %v638_v27  ;;  %v608_v27 = vunpack.c.l.b16 %v520_v22 }
 0x200   :  { %v614_v28 = vpack.c.b16 %v608_v27, %v608_v27 }
 0x202   :  { %676 = vmatpush.bf16.msra.mxu2 %v1302_v9  ;;  %v962_v9 = vld [vmem:[%s1402_s5 + $0x20] sm:$0xff]  ;;  %v1376_v60 = vpop.permute.xlu2 %584 }
 0x205   :  { %942 = vmatmul.msk.bf16.vlgmr.msra.gmra.mxu2 %vm405_vm2, %v958_v41 }
 0x20a   :  { %v786_v39 = vpop.permute.xlu2 %785 }
 0x215   :  { %943 = vmatmul.msk.bf16.gmra.mxu2 %vm405_vm2, %v959_v44 }
 0x225   :  { %944 = vmatmul.msk.bf16.gmra.mxu2 %vm405_vm2, %v960_v23  ;;  %v791_v23 = vpop.permute.xlu0 %790 }
 0x235   :  { %945 = vmatmul.msk.bf16.gmra.mxu2 %vm405_vm2, %v961_v26 }
 0x245   :  { %946 = vmatmul.msk.bf16.gmra.mxu2 %vm405_vm2, %v962_v9  ;;  %v722_v9 = vunpack.c.l.bf16 %v1313_v34 }
 0x255   :  { %947 = vmatmul.msk.bf16.gmra.mxu2 %vm405_vm2, %v614_v28 }
 0x288   :  { %v678_v37 = vpop.f32.mrf.mxu2 }
 0x289   :  { %v679_v38 = vadd.f32 %v678_v37, %v535_v29 }
 0x28b   :  { %v707_v42 = vmax.f32 %v679_v38, 0.0  ;;  %v723_v38 = vunpack.c.l.bf16 %v1315_v36 }
 0x28d   :  { %v729_v14 = vadd.f32 %v718_v43, %v707_v42 }
 0x28f   :  { %v740_v10 = vpack.c.bf16 %v729_v14, %v729_v14 }
 0x290   :  { %v680_v48 = vpop.f32.mrf.mxu2 }
 0x291   :  { %v681_v52 = vadd.f32 %v680_v48, %v540_v30  ;;  %v751_v58 = vunpack.c.l.bf16 %v740_v10  ;;  %v801_v10 = vpop.permute.xlu2 %800 }
 0x293   :  { %v708_v53 = vmax.f32 %v681_v52, 0.0  ;;  %v828_v0 = vmul.f32 %v776_v47, %v751_v58  ;;  %v725_v47 = vunpack.c.l.bf16 %v1323_v57 }
 0x295   :  { %v730_v46 = vadd.f32 %v719_v56, %v708_v53  ;;  %v724_v56 = vunpack.c.l.bf16 %v1321_v54 }
 0x297   :  { %v741_v59 = vpack.c.bf16 %v730_v46, %v730_v46 }
 0x298   :  { %v683_v61 = vpop.f32.mrf.mxu2 }
 0x299   :  { %v752_v62 = vunpack.c.l.bf16 %v741_v59  ;;  %v684_v4 = vadd.f32 %v683_v61, %v545_v31  ;;  %v816_v57 = vpop.permute.xlu2 %815 }
 0x29b   :  { %v829_v11 = vmul.f32 %v781_v63, %v752_v62  ;;  %v709_v2 = vmax.f32 %v684_v4, 0.0  ;;  %v806_v4 = vpop.permute.xlu0 %805 }
 0x29d   :  { %v839_v6 = vadd.f32 %v829_v11, %v828_v0  ;;  %v731_v45 = vadd.f32 %v720_v3, %v709_v2 }
 0x29f   :  { %v742_v8 = vpack.c.bf16 %v731_v45, %v731_v45 }
 0x2a0   :  { %v685_v12 = vpop.f32.mrf.mxu2 }
 0x2a1   :  { %v753_v1 = vunpack.c.l.bf16 %v742_v8  ;;  %v686_v13 = vadd.f32 %v685_v12, %v550_v32  ;;  %v796_v32 = vpop.permute.xlu1 %795  ;;  %v726_v12 = vunpack.c.l.bf16 %v1331_v5 }
 0x2a3   :  { %v830_v15 = vmul.f32 %v786_v39, %v753_v1  ;;  %v710_v16 = vmax.f32 %v686_v13, 0.0  ;;  %v821_v5 = vpop.permute.xlu0 %820 }
 0x2a5   :  { %v840_v40 = vadd.f32 %v839_v6, %v830_v15  ;;  %v732_v19 = vadd.f32 %v721_v55, %v710_v16 }
 0x2a7   :  { %v743_v21 = vpack.c.bf16 %v732_v19, %v732_v19  ;;  %v727_v19 = vunpack.c.l.bf16 %v1333_v7 }
 0x2a8   :  { %v688_v25 = vpop.f32.mrf.mxu2 }
 0x2a9   :  { %v754_v41 = vunpack.c.l.bf16 %v743_v21  ;;  %v689_v44 = vadd.f32 %v688_v25, %v555_v18  ;;  %v811_v54 = vpop.permute.xlu1 %810 }
 0x2ab   :  { %v831_v26 = vmul.f32 %v791_v23, %v754_v41  ;;  %v711_v20 = vmax.f32 %v689_v44, 0.0 }
 0x2ad   :  { %v841_v22 = vadd.f32 %v840_v40, %v831_v26  ;;  %v733_v27 = vadd.f32 %v722_v9, %v711_v20  ;;  %v728_v9 = vunpack.c.l.bf16 %v1339_v17 }
 0x2af   :  { %v744_v28 = vpack.c.bf16 %v733_v27, %v733_v27 }
 0x2b0   :  { %v690_v29 = vpop.f32.mrf.mxu2 }
 0x2b1   :  { %v755_v30 = vunpack.c.l.bf16 %v744_v28  ;;  %v691_v31 = vadd.f32 %v690_v29, %v560_v33 }
 0x2b3   :  { %v832_v37 = vmul.f32 %v796_v32, %v755_v30  ;;  %v712_v24 = vmax.f32 %v691_v31, 0.0  ;;  %v826_v30 = vpop.permute.xlu1 %825 }
 0x2b5   :  { %v842_v42 = vadd.f32 %v841_v22, %v832_v37  ;;  %v734_v43 = vadd.f32 %v723_v38, %v712_v24 }
 0x2b7   :  { %v745_v14 = vpack.c.bf16 %v734_v43, %v734_v43 }
 0x2b8   :  { %v693_v18 = vpop.f32.mrf.mxu2 }
 0x2b9   :  { %v756_v48 = vunpack.c.l.bf16 %v745_v14  ;;  %v694_v52 = vadd.f32 %v693_v18, %v565_v35 }
 0x2bb   :  { %v833_v53 = vmul.f32 %v801_v10, %v756_v48  ;;  %v713_v34 = vmax.f32 %v694_v52, 0.0 }
 0x2bd   :  { %v843_v46 = vadd.f32 %v842_v42, %v833_v53  ;;  %v735_v58 = vadd.f32 %v724_v56, %v713_v34 }
 0x2bf   :  { %v746_v59 = vpack.c.bf16 %v735_v58, %v735_v58 }
 0x2c0   :  { %v695_v33 = vpop.f32.mrf.mxu2 }
 0x2c1   :  { %v757_v61 = vunpack.c.l.bf16 %v746_v59  ;;  %v696_v62 = vadd.f32 %v695_v33, %v1369_v49 }
 0x2c3   :  { %v834_v36 = vmul.f32 %v806_v4, %v757_v61  ;;  %v714_v63 = vmax.f32 %v696_v62, 0.0 }
 0x2c5   :  { %v844_v0 = vadd.f32 %v843_v46, %v834_v36  ;;  %v736_v11 = vadd.f32 %v725_v47, %v714_v63 }
 0x2c7   :  { %v747_v35 = vpack.c.bf16 %v736_v11, %v736_v11 }
 0x2c8   :  { %v698_v2 = vpop.f32.mrf.mxu2 }
 0x2c9   :  { %v758_v3 = vunpack.c.l.bf16 %v747_v35  ;;  %v699_v6 = vadd.f32 %v698_v2, %v1371_v50 }
 0x2cb   :  { %v835_v45 = vmul.f32 %v811_v54, %v758_v3  ;;  %v715_v8 = vmax.f32 %v699_v6, 0.0 }
 0x2cd   :  { %v845_v1 = vadd.f32 %v844_v0, %v835_v45  ;;  %v737_v13 = vadd.f32 %v726_v12, %v715_v8 }
 0x2cf   :  { %v748_v49 = vpack.c.bf16 %v737_v13, %v737_v13 }
 0x2d0   :  { %v700_v39 = vpop.f32.mrf.mxu2 }
 0x2d1   :  { %v759_v15 = vunpack.c.l.bf16 %v748_v49  ;;  %v701_v16 = vadd.f32 %v700_v39, %v1373_v51 }
 0x2d3   :  { %v836_v55 = vmul.f32 %v816_v57, %v759_v15  ;;  %v716_v40 = vmax.f32 %v701_v16, 0.0 }
 0x2d5   :  { %v846_v21 = vadd.f32 %v845_v1, %v836_v55  ;;  %v738_v25 = vadd.f32 %v727_v19, %v716_v40 }
 0x2d7   :  { %v749_v50 = vpack.c.bf16 %v738_v25, %v738_v25 }
 0x2d8   :  { %v703_v41 = vpop.f32.mrf.mxu2 }
 0x2d9   :  { %v760_v44 = vunpack.c.l.bf16 %v749_v50  ;;  %v704_v23 = vadd.f32 %v703_v41, %v1376_v60  ;;  %v861_v60 = vpop.permute.xlu2 %860 }
 0x2da   :  { %v863_v14 = vperm.slane %v861_v60, 0 }
 0x2db   :  { %v837_v26 = vmul.f32 %v821_v5, %v760_v44  ;;  %v717_v20 = vmax.f32 %v704_v23, 0.0 }
 0x2dd   :  { %v847_v22 = vadd.f32 %v846_v21, %v837_v26  ;;  %v739_v27 = vadd.f32 %v728_v9, %v717_v20 }
 0x2df   :  { %v750_v51 = vpack.c.bf16 %v739_v27, %v739_v27 }
 0x2e0   :  { %v705_v28 = vpop.f32.mrf.mxu2 }
 0x2e1   :  { %v761_v29 = vunpack.c.l.bf16 %v750_v51 }
 0x2e3   :  { %v838_v7 = vmul.f32 %v826_v30, %v761_v29 }
 0x2e5   :  { %v849_v31 = vsel %vm848_vm3, %v838_v7, 0.0 }
 0x2e6   :  { %v850_v32 = vadd.f32 %v849_v31, %v847_v22 }
 0x2e8   :  { %v851_v37 = vrot.slane %v850_v32, 4 }
 0x2ea   :  { %v852_v24 = vadd.f32 %v851_v37, %v850_v32 }
 0x2ec   :  { %v853_v38 = vrot.slane %v852_v24, 2 }
 0x2ee   :  { %v854_v42 = vadd.f32 %v853_v38, %v852_v24 }
 0x2f0   :  { %v855_v43 = vrot.slane %v854_v42, 1 }
 0x2f2   :  { %v856_v18 = vadd.f32 %v855_v43, %v854_v42 }
 0x2f4   :  { %v864_v48 = vadd.f32 %v863_v14, %v856_v18 }
 0x2f6   :  { %865 = vst [vmem:[%s1403_s9] sm:$0x1] %v864_v48 }

// kernel: _ffw_impl.1
= control target key start
LH: loop header
LB: loop body
LE: loop exit
PB: predicated region body
PF: predicated region fallthrough
CT: control target
= control target key end

     0   :  { %v947_v0 = vmov 0   ;;  %vm166_vm0 = vcmask 1045504   ;;  %vm147_vm1 = vcmask 97280   ;;  %vm387_vm2 = vcmask 1041408   ;;  %s1333_s2 = inlined_call_operand.vmem [shape: f32[84,1], index: 2, kind: input, shape index: {}]   ;;  %s1334_s0 = inlined_call_operand.vmem [shape: bf16[12,128], index: 0, kind: input, shape index: {}]   ;;  %s1335_s1 = inlined_call_operand.vmem [shape: bf16[84,12], index: 1, kind: input, shape index: {}]   ;;  %s1336_s4 = inlined_call_operand.vmem [shape: f32[84,1], index: 4, kind: input, shape index: {}]   ;;  %s1337_s6 = inlined_call_operand.vmem [shape: f32[84,1], index: 6, kind: input, shape index: {}]   ;;  %s1338_s8 = inlined_call_operand.<no memory space> [shape: f32[1,1], index: 8, kind: input, shape index: {}]   ;;  %s1339_s7 = inlined_call_operand.vmem [shape: f32[84,1], index: 7, kind: input, shape index: {}]   ;;  %s1340_s3 = inlined_call_operand.vmem [shape: bf16[84,84], index: 3, kind: input, shape index: {}]   ;;  %s1341_s5 = inlined_call_operand.vmem [shape: bf16[84,84], index: 5, kind: input, shape index: {}]   ;;  %s1342_s9 = inlined_call_operand.vmem [shape: f32[1,128], index: 9, kind: output, shape index: {}]  }
   0x1   :  { %945 = vset.pattern.permute.xlu1 %v947_v0  ;;  %944 = vset.pattern.permute.xlu0 %v947_v0  ;;  %v58_v1 = vld [vmem:[%s1333_s2 + $0x50] sm:$0xf]  ;;  %v57_v2 = vld [vmem:[%s1333_s2 + $0x48] sm:$0xff]  ;;  %v855_v3 = vld [vmem:[%s1334_s0] sm:$0xf]  ;;  %v14_v45 = vstv %s1338_s8  ;;  %vm368_vm3 = vcmask 687104  }
   0x2   :  { %111 = vperm.xlu0 %944, %v58_v1   ;;  %106 = vperm.xlu1 %945, %v57_v2   ;;  %v920_v4 = vld [vmem:[%s1334_s0] sm:$0x30]  ;;  %v55_v6 = vld [vmem:[%s1333_s2 + $0x38] sm:$0xff]  ;;  %v54_v10 = vld [vmem:[%s1333_s2 + $0x30] sm:$0xff]  ;;  %15 = vst [vmem:[#allocation2] sm:$0x1] %v14_v45 }
   0x3   :  { %v856_v5 = vor.u32 %v920_v4, %v855_v3  ;;  %946 = vset.pattern.permute.xlu2 %v947_v0  ;;  %v915_v8 = vld [vmem:[%s1335_s1] sm:$0xff]  ;;  %v53_v12 = vld [vmem:[%s1333_s2 + $0x28] sm:$0xff]  ;;  %v50_v13 = vld [vmem:[%s1333_s2 + $0x10] sm:$0xff]  ;;  %vm811_vm4 = vcmask 1043456  }
   0x4   :  { %96 = vperm.xlu2 %946, %v55_v6   ;;  %v56_v9 = vld [vmem:[%s1333_s2 + $0x40] sm:$0xff]  ;;  %v51_v14 = vld [vmem:[%s1333_s2 + $0x18] sm:$0xff]  ;;  %v916_v15 = vld [vmem:[%s1335_s1 + $0x8] sm:$0xff] }
   0x5   :  { %v168_v7 = vsel %vm166_vm0, %v856_v5, 0  ;;  %v52_v11 = vld [vmem:[%s1333_s2 + $0x20] sm:$0xff]  ;;  %v49_v16 = vld [vmem:[%s1333_s2 + $0x8] sm:$0xff]  ;;  %v251_v18 = vld [vmem:[%s1336_s4 + $0x50] sm:$0xf] }
   0x6   :  { %177 = vmatpush.bf16.msra.mxu0 %v168_v7  ;;  %v48_v17 = vld [vmem:[%s1333_s2] sm:$0xff]  ;;  %v250_v19 = vld [vmem:[%s1336_s4 + $0x48] sm:$0xff]  ;;  %v247_v21 = vld [vmem:[%s1336_s4 + $0x30] sm:$0xff] }
   0x7   :  { %v249_v20 = vld [vmem:[%s1336_s4 + $0x40] sm:$0xff]  ;;  %v917_v22 = vld [vmem:[%s1335_s1 + $0x10] sm:$0xff]  ;;  %v248_v24 = vld [vmem:[%s1336_s4 + $0x38] sm:$0xff] }
   0x8   :  { %v245_v23 = vld [vmem:[%s1336_s4 + $0x20] sm:$0xff]  ;;  %v246_v25 = vld [vmem:[%s1336_s4 + $0x28] sm:$0xff]  ;;  %v244_v26 = vld [vmem:[%s1336_s4 + $0x18] sm:$0xff] }
   0x9   :  { %857 = vmatmul.msk.bf16.vlgmr.msra.gmra.mxu0 %vm147_vm1, %v915_v8  ;;  %v243_v27 = vld [vmem:[%s1336_s4 + $0x10] sm:$0xff]  ;;  %v241_v28 = vld [vmem:[%s1336_s4] sm:$0xff]  ;;  %v918_v29 = vld [vmem:[%s1335_s1 + $0x18] sm:$0xff] }
   0xa   :  { %101 = vperm.xlu0 %944, %v56_v9   ;;  %91 = vperm.xlu1 %945, %v54_v10   ;;  %v484_v30 = vld [vmem:[%s1337_s6] sm:$0xff]  ;;  %v242_v31 = vld [vmem:[%s1336_s4 + $0x8] sm:$0xff]  ;;  %v487_v33 = vld [vmem:[%s1337_s6 + $0x18] sm:$0xff] }
   0xb   :  { %v485_v32 = vld [vmem:[%s1337_s6 + $0x8] sm:$0xff]  ;;  %v486_v34 = vld [vmem:[%s1337_s6 + $0x10] sm:$0xff]  ;;  %v488_v35 = vld [vmem:[%s1337_s6 + $0x20] sm:$0xff] }
   0xc   :  { %81 = vperm.xlu2 %946, %v52_v11   ;;  %v919_v36 = vld [vmem:[%s1335_s1 + $0x20] sm:$0xff]  ;;  %v490_v37 = vld [vmem:[%s1337_s6 + $0x30] sm:$0xff]  ;;  %v489_v38 = vld [vmem:[%s1337_s6 + $0x28] sm:$0xff] }
   0xd   :  { %v491_v39 = vld [vmem:[%s1337_s6 + $0x38] sm:$0xff]  ;;  %v45_v40 = vld [vmem:[%s1335_s1 + $0x28] sm:$0x3]  ;;  %v492_v42 = vld [vmem:[%s1337_s6 + $0x40] sm:$0xff] }
   0xe   :  { %v493_v41 = vld [vmem:[%s1337_s6 + $0x48] sm:$0xff]  ;;  %v135_v43 = vunpack.c.l.b16 %v45_v40  ;;  %v494_v44 = vld [vmem:[%s1337_s6 + $0x50] sm:$0xf]  ;;  %v725_v48 = vld [vmem:[%s1339_s7] sm:$0xff] }
   0xf   :  { %v726_v47 = vld [vmem:[%s1339_s7 + $0x8] sm:$0xff]  ;;  %v727_v49 = vld [vmem:[%s1339_s7 + $0x10] sm:$0xff]  ;;  %v729_v50 = vld [vmem:[%s1339_s7 + $0x20] sm:$0xff] }
  0x10   :  { %v141_v46 = vpack.c.b16 %v135_v43, %v135_v43  ;;  %v728_v51 = vld [vmem:[%s1339_s7 + $0x18] sm:$0xff]  ;;  %v730_v52 = vld [vmem:[%s1339_s7 + $0x28] sm:$0xff]  ;;  %v731_v54 = vld [vmem:[%s1339_s7 + $0x30] sm:$0xff] }
  0x11   :  { %v732_v53 = vld [vmem:[%s1339_s7 + $0x38] sm:$0xff]  ;;  %v733_v55 = vld [vmem:[%s1339_s7 + $0x40] sm:$0xff]  ;;  %v735_v56 = vld [vmem:[%s1339_s7 + $0x50] sm:$0xf] }
  0x12   :  { %86 = vperm.xlu0 %944, %v53_v12   ;;  %71 = vperm.xlu1 %945, %v50_v13   ;;  %v734_v57 = vld [vmem:[%s1339_s7 + $0x48] sm:$0xff]  ;;  %v820_v58 = vld [vmem:[#allocation2] sm:$0x1] }
  0x14   :  { %76 = vperm.xlu2 %946, %v51_v14  }
  0x19   :  { %858 = vmatmul.msk.bf16.gmra.mxu0 %vm147_vm1, %v916_v15 }
  0x1a   :  { %66 = vperm.xlu1 %945, %v49_v16   ;;  %61 = vperm.xlu0 %944, %v48_v17  }
  0x1c   :  { %304 = vperm.xlu2 %946, %v251_v18  }
  0x22   :  { %299 = vperm.xlu1 %945, %v250_v19   ;;  %294 = vperm.xlu0 %944, %v249_v20  }
  0x24   :  { %284 = vperm.xlu2 %946, %v247_v21  }
  0x29   :  { %859 = vmatmul.msk.bf16.gmra.mxu0 %vm147_vm1, %v917_v22 }
  0x2a   :  { %274 = vperm.xlu1 %945, %v245_v23   ;;  %289 = vperm.xlu0 %944, %v248_v24  }
  0x2c   :  { %279 = vperm.xlu2 %946, %v246_v25  }
  0x32   :  { %269 = vperm.xlu1 %945, %v244_v26   ;;  %264 = vperm.xlu0 %944, %v243_v27  }
  0x34   :  { %254 = vperm.xlu2 %946, %v241_v28  }
  0x39   :  { %860 = vmatmul.msk.bf16.gmra.mxu0 %vm147_vm1, %v918_v29 }
  0x3a   :  { %497 = vperm.xlu1 %945, %v484_v30   ;;  %259 = vperm.xlu0 %944, %v242_v31  }
  0x3c   :  { %502 = vperm.xlu2 %946, %v485_v32  }
  0x42   :  { %512 = vperm.xlu1 %945, %v487_v33   ;;  %507 = vperm.xlu0 %944, %v486_v34  }
  0x44   :  { %517 = vperm.xlu2 %946, %v488_v35  }
  0x49   :  { %861 = vmatmul.msk.bf16.gmra.mxu0 %vm147_vm1, %v919_v36 }
  0x4a   :  { %527 = vperm.xlu1 %945, %v490_v37   ;;  %522 = vperm.xlu0 %944, %v489_v38  }
  0x4c   :  { %532 = vperm.xlu2 %946, %v491_v39  }
  0x52   :  { %542 = vperm.xlu1 %945, %v493_v41   ;;  %537 = vperm.xlu0 %944, %v492_v42  }
  0x54   :  { %547 = vperm.xlu2 %946, %v494_v44  }
  0x59   :  { %862 = vmatmul.msk.bf16.gmra.mxu0 %vm147_vm1, %v141_v46 }
  0x5a   :  { %743 = vperm.xlu1 %945, %v726_v47   ;;  %738 = vperm.xlu0 %944, %v725_v48  }
  0x5c   :  { %748 = vperm.xlu2 %946, %v727_v49  }
  0x5e   :  { %v97_v2 = vpop.permute.xlu2 %96 }
  0x62   :  { %758 = vperm.xlu1 %945, %v729_v50   ;;  %753 = vperm.xlu0 %944, %v728_v51  }
  0x64   :  { %763 = vperm.xlu2 %946, %v730_v52  }
  0x66   :  { %v82_v13 = vpop.permute.xlu2 %81 }
  0x6a   :  { %773 = vperm.xlu1 %945, %v732_v53   ;;  %768 = vperm.xlu0 %944, %v731_v54  }
  0x6c   :  { %778 = vperm.xlu2 %946, %v733_v55  }
  0x6e   :  { %v77_v19 = vpop.permute.xlu2 %76 }
  0x72   :  { %788 = vperm.xlu1 %945, %v735_v56   ;;  %783 = vperm.xlu0 %944, %v734_v57  }
  0x74   :  { %v112_v59 = vpop.permute.xlu0 %111  ;;  %v107_v60 = vpop.permute.xlu1 %106  ;;  %823 = vperm.xlu2 %946, %v820_v58  }
  0x7c   :  { %v102_v61 = vpop.permute.xlu0 %101  ;;  %v92_v62 = vpop.permute.xlu1 %91 }
  0x84   :  { %v87_v63 = vpop.permute.xlu0 %86  ;;  %v72_v0 = vpop.permute.xlu1 %71 }
  0x86   :  { %v179_v1 = vpop.f32.mrf.mxu0 }
  0x8c   :  { %v67_v3 = vpop.permute.xlu1 %66  ;;  %v62_v4 = vpop.permute.xlu0 %61 }
  0x8d   :  { %v180_v5 = vadd.f32 %v179_v1, %v62_v4 }
  0x8e   :  { %v181_v6 = vpop.f32.mrf.mxu0 }
  0x8f   :  { %v208_v7 = vmax.f32 %v180_v5, 0.0  ;;  %v182_v8 = vadd.f32 %v181_v6, %v67_v3  ;;  %v921_v5 = vld [vmem:[%s1340_s3] sm:$0xff]  ;;  %v922_v6 = vld [vmem:[%s1340_s3 + $0x8] sm:$0xff] }
  0x91   :  { %v1163_v9 = vpack.c.bf16 %v208_v7, %v208_v7  ;;  %v209_v10 = vmax.f32 %v182_v8, 0.0  ;;  %v923_v7 = vld [vmem:[%s1340_s3 + $0x10] sm:$0xff]  ;;  %v924_v8 = vld [vmem:[%s1340_s3 + $0x18] sm:$0xff] }
  0x93   :  { %v1165_v11 = vpack.c.bf16 %v209_v10, %v209_v10  ;;  %v346_v12 = vunpack.c.l.b16 %v1163_v9  ;;  %v925_v10 = vld [vmem:[%s1340_s3 + $0x20] sm:$0xff] }
  0x95   :  { %v347_v14 = vunpack.c.l.b16 %v1165_v11 }
  0x96   :  { %v184_v15 = vpop.f32.mrf.mxu0 }
  0x97   :  { %v1169_v16 = vpack.c.b16 %v347_v14, %v346_v12  ;;  %v185_v17 = vadd.f32 %v184_v15, %v72_v0  ;;  %v240_v12 = vld [vmem:[%s1340_s3 + $0x28] sm:$0x3]  ;;  %v1225_v15 = vpop.permute.xlu2 %304 }
  0x99   :  { %v210_v18 = vmax.f32 %v185_v17, 0.0 }
  0x9b   :  { %v1171_v22 = vpack.c.bf16 %v210_v18, %v210_v18 }
  0x9d   :  { %v348_v25 = vunpack.c.l.b16 %v1171_v22 }
  0x9e   :  { %v186_v20 = vpop.f32.mrf.mxu0 }
  0x9f   :  { %v187_v21 = vadd.f32 %v186_v20, %v77_v19  ;;  %v285_v17 = vpop.permute.xlu2 %284  ;;  %v1229_v20 = vpop.permute.xlu1 %299 }
  0xa1   :  { %v211_v23 = vmax.f32 %v187_v21, 0.0 }
  0xa3   :  { %v1173_v24 = vpack.c.bf16 %v211_v23, %v211_v23 }
  0xa5   :  { %v349_v26 = vunpack.c.l.b16 %v1173_v24 }
  0xa6   :  { %v189_v27 = vpop.f32.mrf.mxu0 }
  0xa7   :  { %v358_v28 = vpack.c.b16 %v349_v26, %v348_v25  ;;  %v190_v48 = vadd.f32 %v189_v27, %v82_v13  ;;  %v328_v13 = vunpack.c.l.b16 %v240_v12  ;;  %v280_v19 = vpop.permute.xlu2 %279  ;;  %v275_v27 = vpop.permute.xlu1 %274 }
  0xa9   :  { %v212_v57 = vmax.f32 %v190_v48, 0.0  ;;  %v334_v14 = vpack.c.b16 %v328_v13, %v328_v13  ;;  %v443_v48 = vunpack.c.l.bf16 %v1173_v24 }
  0xae   :  { %v191_v29 = vpop.f32.mrf.mxu0 }
  0xaf   :  { %v192_v44 = vadd.f32 %v191_v29, %v87_v63  ;;  %v1194_v63 = vpack.c.bf16 %v212_v57, %v212_v57  ;;  %v255_v23 = vpop.permute.xlu2 %254 }
  0xb1   :  { %v213_v53 = vmax.f32 %v192_v44, 0.0  ;;  %v350_v3 = vunpack.c.l.b16 %v1194_v63  ;;  %v270_v44 = vpop.permute.xlu1 %269 }
  0xb6   :  { %v194_v30 = vpop.f32.mrf.mxu0 }
  0xb7   :  { %v195_v41 = vadd.f32 %v194_v30, %v92_v62  ;;  %v440_v30 = vunpack.c.l.bf16 %v1163_v9 }
  0xb9   :  { %v214_v49 = vmax.f32 %v195_v41, 0.0 }
  0xbb   :  { %v1188_v58 = vpack.c.bf16 %v214_v49, %v214_v49 }
  0xbd   :  { %v352_v0 = vunpack.c.l.b16 %v1188_v58 }
  0xbe   :  { %v196_v31 = vpop.f32.mrf.mxu0 }
  0xbf   :  { %v197_v38 = vadd.f32 %v196_v31, %v97_v2 }
  0xc1   :  { %v215_v45 = vmax.f32 %v197_v38, 0.0  ;;  %v441_v38 = vunpack.c.l.bf16 %v1165_v11 }
  0xc3   :  { %v1184_v54 = vpack.c.bf16 %v215_v45, %v215_v45 }
  0xc5   :  { %v353_v62 = vunpack.c.l.b16 %v1184_v54 }
  0xc6   :  { %v199_v32 = vpop.f32.mrf.mxu0 }
  0xc7   :  { %v200_v35 = vadd.f32 %v199_v32, %v102_v61  ;;  %v360_v1 = vpack.c.b16 %v353_v62, %v352_v0  ;;  %v444_v0 = vunpack.c.l.bf16 %v1194_v63  ;;  %v446_v63 = vunpack.c.l.bf16 %v1188_v58 }
  0xc9   :  { %v216_v42 = vmax.f32 %v200_v35, 0.0 }
  0xcb   :  { %v1182_v50 = vpack.c.bf16 %v216_v42, %v216_v42 }
  0xce   :  { %v201_v33 = vpop.f32.mrf.mxu0 }
  0xcf   :  { %v202_v34 = vadd.f32 %v201_v33, %v107_v60  ;;  %v1191_v60 = vpack.c.bf16 %v213_v53, %v213_v53 }
  0xd1   :  { %v217_v39 = vmax.f32 %v202_v34, 0.0  ;;  %v351_v2 = vunpack.c.l.b16 %v1191_v60  ;;  %v442_v34 = vunpack.c.l.bf16 %v1171_v22 }
  0xd3   :  { %v1179_v46 = vpack.c.bf16 %v217_v39, %v217_v39  ;;  %v359_v4 = vpack.c.b16 %v351_v2, %v350_v3 }
  0xd5   :  { %v355_v55 = vunpack.c.l.b16 %v1179_v46 }
  0xd6   :  { %v204_v36 = vpop.f32.mrf.mxu0 }
  0xd7   :  { %v205_v37 = vadd.f32 %v204_v36, %v112_v59  ;;  %v354_v59 = vunpack.c.l.b16 %v1182_v50 }
  0xd9   :  { %v218_v40 = vmax.f32 %v205_v37, 0.0  ;;  %v361_v61 = vpack.c.b16 %v355_v55, %v354_v59 }
  0xdb   :  { %v1177_v43 = vpack.c.bf16 %v218_v40, %v218_v40 }
  0xdd   :  { %v356_v47 = vunpack.c.l.b16 %v1177_v43 }
  0xde   :  { %v206_v51 = vpop.f32.mrf.mxu0 }
  0xdf   :  { %v362_v52 = vpack.c.b16 %v356_v47, %v356_v47 }
  0xe1   :  { %v389_v56 = vsel %vm387_vm2, %v362_v52, 0 }
  0xe2   :  { %393 = vmatpush.bf16.msra.mxu1 %v389_v56  ;;  %931 = vmatpush.bf16.msra.mxu3 %v389_v56 }
  0xe6   :  { %394 = vmatpush.bf16.msra.mxu1 %v361_v61  ;;  %932 = vmatpush.bf16.msra.mxu3 %v361_v61 }
  0xea   :  { %395 = vmatpush.bf16.msra.mxu1 %v360_v1  ;;  %933 = vmatpush.bf16.msra.mxu3 %v360_v1 }
  0xee   :  { %396 = vmatpush.bf16.msra.mxu1 %v359_v4  ;;  %934 = vmatpush.bf16.msra.mxu3 %v359_v4  ;;  %v445_v4 = vunpack.c.l.bf16 %v1191_v60  ;;  %v447_v60 = vunpack.c.l.bf16 %v1184_v54 }
  0xf2   :  { %397 = vmatpush.bf16.msra.mxu1 %v358_v28  ;;  %935 = vmatpush.bf16.msra.mxu3 %v358_v28 }
  0xf6   :  { %398 = vmatpush.bf16.msra.mxu1 %v1169_v16  ;;  %936 = vmatpush.bf16.msra.mxu3 %v1169_v16  ;;  %v1227_v16 = vpop.permute.xlu0 %294 }
  0xf9   :  { %883 = vmatmul.msk.bf16.vlgmr.msra.gmra.mxu1 %vm368_vm3, %v921_v5  ;;  %884 = vmatmul.msk.bf16.vlgmr.msra.gmra.mxu3 %vm368_vm3, %v922_v6 }
  0xfe   :  { %v290_v18 = vpop.permute.xlu0 %289 }
 0x106   :  { %v265_v21 = vpop.permute.xlu0 %264 }
 0x109   :  { %885 = vmatmul.msk.bf16.gmra.mxu3 %vm368_vm3, %v923_v7 }
 0x10e   :  { %v260_v32 = vpop.permute.xlu0 %259 }
 0x119   :  { %886 = vmatmul.msk.bf16.gmra.mxu3 %vm368_vm3, %v924_v8 }
 0x129   :  { %887 = vmatmul.msk.bf16.gmra.mxu3 %vm368_vm3, %v925_v10 }
 0x139   :  { %888 = vmatmul.msk.bf16.gmra.mxu3 %vm368_vm3, %v334_v14 }
 0x176   :  { %v400_v25 = vpop.f32.mrf.mxu1 }
 0x177   :  { %v401_v26 = vadd.f32 %v400_v25, %v255_v23 }
 0x179   :  { %v429_v28 = vmax.f32 %v401_v26, 0.0 }
 0x17b   :  { %v451_v35 = vadd.f32 %v440_v30, %v429_v28 }
 0x17c   :  { %v405_v29 = vpop.f32.mrf.mxu3 }
 0x17d   :  { %v406_v31 = vadd.f32 %v405_v29, %v265_v21  ;;  %v1234_v41 = vpack.c.bf16 %v451_v35, %v451_v35  ;;  %v448_v35 = vunpack.c.l.bf16 %v1182_v50  ;;  %v450_v50 = vunpack.c.l.bf16 %v1177_v43  ;;  %v926_v43 = vld [vmem:[%s1341_s5] sm:$0xff] }
 0x17e   :  { %v402_v33 = vpop.f32.mrf.mxu1 }
 0x17f   :  { %v431_v36 = vmax.f32 %v406_v31, 0.0  ;;  %v403_v37 = vadd.f32 %v402_v33, %v260_v32  ;;  %v589_v22 = vunpack.c.l.b16 %v1234_v41 }
 0x181   :  { %v453_v39 = vadd.f32 %v442_v34, %v431_v36  ;;  %v430_v40 = vmax.f32 %v403_v37, 0.0  ;;  %v449_v37 = vunpack.c.l.bf16 %v1179_v46 }
 0x183   :  { %v452_v42 = vadd.f32 %v441_v38, %v430_v40  ;;  %v1241_v52 = vpack.c.bf16 %v453_v39, %v453_v39 }
 0x184   :  { %v407_v45 = vpop.f32.mrf.mxu3 }
 0x185   :  { %v1236_v47 = vpack.c.bf16 %v452_v42, %v452_v42  ;;  %v408_v9 = vadd.f32 %v407_v45, %v270_v44  ;;  %v591_v59 = vunpack.c.l.b16 %v1241_v52 }
 0x187   :  { %v432_v49 = vmax.f32 %v408_v9, 0.0  ;;  %v590_v51 = vunpack.c.l.b16 %v1236_v47 }
 0x189   :  { %v454_v11 = vadd.f32 %v443_v48, %v432_v49  ;;  %v1243_v53 = vpack.c.b16 %v590_v51, %v589_v22 }
 0x18b   :  { %v1245_v55 = vpack.c.bf16 %v454_v11, %v454_v11 }
 0x18c   :  { %v410_v56 = vpop.f32.mrf.mxu3 }
 0x18d   :  { %v411_v57 = vadd.f32 %v410_v56, %v275_v27  ;;  %v592_v61 = vunpack.c.l.b16 %v1245_v55 }
 0x18f   :  { %v601_v62 = vpack.c.b16 %v592_v61, %v591_v59  ;;  %v433_v24 = vmax.f32 %v411_v57, 0.0  ;;  %v928_v57 = vld [vmem:[%s1341_s5 + $0x10] sm:$0xff]  ;;  %v929_v59 = vld [vmem:[%s1341_s5 + $0x18] sm:$0xff]  ;;  %v483_v61 = vld [vmem:[%s1341_s5 + $0x28] sm:$0x3] }
 0x191   :  { %v455_v2 = vadd.f32 %v444_v0, %v433_v24  ;;  %v498_v0 = vpop.permute.xlu1 %497 }
 0x193   :  { %v1251_v6 = vpack.c.bf16 %v455_v2, %v455_v2  ;;  %v508_v2 = vpop.permute.xlu0 %507 }
 0x194   :  { %v412_v1 = vpop.f32.mrf.mxu3 }
 0x195   :  { %v413_v3 = vadd.f32 %v412_v1, %v280_v19  ;;  %v593_v13 = vunpack.c.l.b16 %v1251_v6  ;;  %v503_v1 = vpop.permute.xlu2 %502 }
 0x197   :  { %v434_v5 = vmax.f32 %v413_v3, 0.0 }
 0x199   :  { %v456_v7 = vadd.f32 %v445_v4, %v434_v5  ;;  %v513_v3 = vpop.permute.xlu1 %512 }
 0x19b   :  { %v1253_v8 = vpack.c.bf16 %v456_v7, %v456_v7  ;;  %v523_v5 = vpop.permute.xlu0 %522 }
 0x19c   :  { %v415_v10 = vpop.f32.mrf.mxu3 }
 0x19d   :  { %v416_v12 = vadd.f32 %v415_v10, %v285_v17  ;;  %v594_v14 = vunpack.c.l.b16 %v1253_v8  ;;  %v518_v4 = vpop.permute.xlu2 %517 }
 0x19f   :  { %v602_v21 = vpack.c.b16 %v594_v14, %v593_v13  ;;  %v435_v23 = vmax.f32 %v416_v12, 0.0 }
 0x1a1   :  { %v457_v19 = vadd.f32 %v446_v63, %v435_v23  ;;  %v528_v7 = vpop.permute.xlu1 %527  ;;  %v681_v23 = vunpack.c.l.bf16 %v1234_v41 }
 0x1a3   :  { %v1259_v28 = vpack.c.bf16 %v457_v19, %v457_v19 }
 0x1a4   :  { %v417_v25 = vpop.f32.mrf.mxu3 }
 0x1a5   :  { %v418_v26 = vadd.f32 %v417_v25, %v290_v18  ;;  %v595_v32 = vunpack.c.l.b16 %v1259_v28  ;;  %v1307_v10 = vpop.permute.xlu2 %532 }
 0x1a7   :  { %v436_v27 = vmax.f32 %v418_v26, 0.0 }
 0x1a9   :  { %v458_v29 = vadd.f32 %v447_v60, %v436_v27  ;;  %v1312_v26 = vpop.permute.xlu1 %542 }
 0x1ab   :  { %v1261_v30 = vpack.c.bf16 %v458_v29, %v458_v29  ;;  %v683_v29 = vunpack.c.l.bf16 %v1241_v52  ;;  %v684_v52 = vunpack.c.l.bf16 %v1245_v55 }
 0x1ac   :  { %v420_v17 = vpop.f32.mrf.mxu3 }
 0x1ad   :  { %v421_v31 = vadd.f32 %v420_v17, %v1227_v16  ;;  %v596_v33 = vunpack.c.l.b16 %v1261_v30 }
 0x1af   :  { %v603_v34 = vpack.c.b16 %v596_v33, %v595_v32  ;;  %v437_v58 = vmax.f32 %v421_v31, 0.0  ;;  %v1315_v31 = vpop.permute.xlu2 %547 }
 0x1b1   :  { %v459_v36 = vadd.f32 %v448_v35, %v437_v58  ;;  %v682_v58 = vunpack.c.l.bf16 %v1236_v47 }
 0x1b3   :  { %v1269_v39 = vpack.c.bf16 %v459_v36, %v459_v36 }
 0x1b4   :  { %v422_v18 = vpop.f32.mrf.mxu3 }
 0x1b5   :  { %v423_v54 = vadd.f32 %v422_v18, %v1229_v20  ;;  %v597_v45 = vunpack.c.l.b16 %v1269_v39 }
 0x1b7   :  { %v438_v38 = vmax.f32 %v423_v54, 0.0 }
 0x1b9   :  { %v460_v40 = vadd.f32 %v449_v37, %v438_v38 }
 0x1bb   :  { %v1271_v42 = vpack.c.bf16 %v460_v40, %v460_v40 }
 0x1bc   :  { %v425_v16 = vpop.f32.mrf.mxu3 }
 0x1bd   :  { %v426_v44 = vadd.f32 %v425_v16, %v1225_v15  ;;  %v598_v9 = vunpack.c.l.b16 %v1271_v42  ;;  %v927_v15 = vld [vmem:[%s1341_s5 + $0x8] sm:$0xff] }
 0x1bf   :  { %v439_v48 = vmax.f32 %v426_v44, 0.0  ;;  %v604_v49 = vpack.c.b16 %v598_v9, %v597_v45  ;;  %v744_v45 = vpop.permute.xlu1 %743 }
 0x1c1   :  { %v461_v20 = vadd.f32 %v450_v50, %v439_v48 }
 0x1c3   :  { %v1277_v22 = vpack.c.bf16 %v461_v20, %v461_v20 }
 0x1c4   :  { %v427_v46 = vpop.f32.mrf.mxu3 }
 0x1c5   :  { %v599_v51 = vunpack.c.l.b16 %v1277_v22 }
 0x1c7   :  { %v605_v11 = vpack.c.b16 %v599_v51, %v599_v51 }
 0x1c9   :  { %v630_v56 = vsel %vm387_vm2, %v605_v11, 0 }
 0x1ca   :  { %634 = vmatpush.bf16.msrb.mxu1 %v630_v56  ;;  %937 = vmatpush.bf16.msra.mxu2 %v630_v56 }
 0x1ce   :  { %635 = vmatpush.bf16.msrb.mxu1 %v604_v49  ;;  %938 = vmatpush.bf16.msra.mxu2 %v604_v49  ;;  %v749_v49 = vpop.permute.xlu2 %748 }
 0x1d2   :  { %636 = vmatpush.bf16.msrb.mxu1 %v603_v34  ;;  %939 = vmatpush.bf16.msra.mxu2 %v603_v34 }
 0x1d6   :  { %637 = vmatpush.bf16.msrb.mxu1 %v602_v21  ;;  %940 = vmatpush.bf16.msra.mxu2 %v602_v21  ;;  %v1309_v21 = vpop.permute.xlu0 %537 }
 0x1da   :  { %638 = vmatpush.bf16.msrb.mxu1 %v601_v62  ;;  %941 = vmatpush.bf16.msra.mxu2 %v601_v62  ;;  %v571_v62 = vunpack.c.l.b16 %v483_v61 }
 0x1dc   :  { %v577_v24 = vpack.c.b16 %v571_v62, %v571_v62 }
 0x1de   :  { %639 = vmatpush.bf16.msrb.mxu1 %v1243_v53  ;;  %942 = vmatpush.bf16.msra.mxu2 %v1243_v53  ;;  %v930_v53 = vld [vmem:[%s1341_s5 + $0x20] sm:$0xff]  ;;  %v739_v41 = vpop.permute.xlu0 %738 }
 0x1e1   :  { %909 = vmatmul.msk.bf16.vlgmr.msrb.gmra.mxu1 %vm368_vm3, %v926_v43  ;;  %910 = vmatmul.msk.bf16.vlgmr.msra.gmra.mxu2 %vm368_vm3, %v927_v15 }
 0x1e6   :  { %v754_v15 = vpop.permute.xlu0 %753 }
 0x1f1   :  { %911 = vmatmul.msk.bf16.gmra.mxu2 %vm368_vm3, %v928_v57 }
 0x201   :  { %912 = vmatmul.msk.bf16.gmra.mxu2 %vm368_vm3, %v929_v59 }
 0x211   :  { %913 = vmatmul.msk.bf16.gmra.mxu2 %vm368_vm3, %v930_v53  ;;  %v685_v53 = vunpack.c.l.bf16 %v1251_v6 }
 0x221   :  { %914 = vmatmul.msk.bf16.gmra.mxu2 %vm368_vm3, %v577_v24 }
 0x25e   :  { %v641_v12 = vpop.f32.mrf.mxu1 }
 0x25f   :  { %v642_v13 = vadd.f32 %v641_v12, %v498_v0 }
 0x261   :  { %v670_v14 = vmax.f32 %v642_v13, 0.0  ;;  %v686_v13 = vunpack.c.l.bf16 %v1253_v8 }
 0x263   :  { %v692_v25 = vadd.f32 %v681_v23, %v670_v14 }
 0x264   :  { %v646_v63 = vpop.f32.mrf.mxu2 }
 0x265   :  { %v647_v19 = vadd.f32 %v646_v63, %v508_v2  ;;  %v703_v32 = vpack.c.bf16 %v692_v25, %v692_v25  ;;  %v759_v2 = vpop.permute.xlu1 %758 }
 0x266   :  { %v643_v60 = vpop.f32.mrf.mxu1 }
 0x267   :  { %v672_v27 = vmax.f32 %v647_v19, 0.0  ;;  %v644_v17 = vadd.f32 %v643_v60, %v503_v1  ;;  %v714_v54 = vunpack.c.l.bf16 %v703_v32  ;;  %v764_v60 = vpop.permute.xlu2 %763 }
 0x269   :  { %v694_v33 = vadd.f32 %v683_v29, %v672_v27  ;;  %v671_v34 = vmax.f32 %v644_v17, 0.0  ;;  %v791_v9 = vmul.f32 %v739_v41, %v714_v54  ;;  %v687_v29 = vunpack.c.l.bf16 %v1259_v28 }
 0x26a   :  { %v688_v41 = vunpack.c.l.bf16 %v1261_v30 }
 0x26b   :  { %v705_v35 = vpack.c.bf16 %v694_v33, %v694_v33  ;;  %v693_v18 = vadd.f32 %v682_v58, %v671_v34 }
 0x26c   :  { %v648_v36 = vpop.f32.mrf.mxu2 }
 0x26d   :  { %v704_v37 = vpack.c.bf16 %v693_v18, %v693_v18  ;;  %v649_v38 = vadd.f32 %v648_v36, %v513_v3  ;;  %v716_v40 = vunpack.c.l.bf16 %v705_v35  ;;  %v769_v35 = vpop.permute.xlu0 %768  ;;  %v774_v28 = vpop.permute.xlu1 %773 }
 0x26f   :  { %v715_v16 = vunpack.c.l.bf16 %v704_v37  ;;  %v673_v44 = vmax.f32 %v649_v38, 0.0  ;;  %v793_v20 = vmul.f32 %v749_v49, %v716_v40  ;;  %v779_v30 = vpop.permute.xlu2 %778 }
 0x271   :  { %v792_v50 = vmul.f32 %v744_v45, %v715_v16  ;;  %v695_v48 = vadd.f32 %v684_v52, %v673_v44  ;;  %v689_v52 = vunpack.c.l.bf16 %v1269_v39 }
 0x273   :  { %v802_v46 = vadd.f32 %v792_v50, %v791_v9  ;;  %v706_v47 = vpack.c.bf16 %v695_v48, %v695_v48 }
 0x274   :  { %v651_v51 = vpop.f32.mrf.mxu2 }
 0x275   :  { %v717_v11 = vunpack.c.l.bf16 %v706_v47  ;;  %v803_v56 = vadd.f32 %v802_v46, %v793_v20  ;;  %v652_v43 = vadd.f32 %v651_v51, %v518_v4  ;;  %v690_v47 = vunpack.c.l.bf16 %v1271_v42  ;;  %v784_v39 = vpop.permute.xlu0 %783 }
 0x277   :  { %v794_v57 = vmul.f32 %v754_v15, %v717_v11  ;;  %v674_v59 = vmax.f32 %v652_v43, 0.0 }
 0x279   :  { %v804_v61 = vadd.f32 %v803_v56, %v794_v57  ;;  %v696_v62 = vadd.f32 %v685_v53, %v674_v59  ;;  %v691_v53 = vunpack.c.l.bf16 %v1277_v22 }
 0x27b   :  { %v707_v55 = vpack.c.bf16 %v696_v62, %v696_v62 }
 0x27c   :  { %v653_v24 = vpop.f32.mrf.mxu2 }
 0x27d   :  { %v718_v0 = vunpack.c.l.bf16 %v707_v55  ;;  %v654_v1 = vadd.f32 %v653_v24, %v523_v5 }
 0x27f   :  { %v795_v3 = vmul.f32 %v759_v2, %v718_v0  ;;  %v675_v12 = vmax.f32 %v654_v1, 0.0  ;;  %v789_v0 = vpop.permute.xlu1 %788 }
 0x281   :  { %v805_v14 = vadd.f32 %v804_v61, %v795_v3  ;;  %v697_v23 = vadd.f32 %v686_v13, %v675_v12 }
 0x283   :  { %v708_v63 = vpack.c.bf16 %v697_v23, %v697_v23 }
 0x284   :  { %v656_v4 = vpop.f32.mrf.mxu2 }
 0x285   :  { %v719_v25 = vunpack.c.l.bf16 %v708_v63  ;;  %v657_v19 = vadd.f32 %v656_v4, %v528_v7 }
 0x287   :  { %v796_v27 = vmul.f32 %v764_v60, %v719_v25  ;;  %v676_v6 = vmax.f32 %v657_v19, 0.0 }
 0x289   :  { %v806_v17 = vadd.f32 %v805_v14, %v796_v27  ;;  %v698_v32 = vadd.f32 %v687_v29, %v676_v6 }
 0x28b   :  { %v709_v33 = vpack.c.bf16 %v698_v32, %v698_v32 }
 0x28c   :  { %v658_v5 = vpop.f32.mrf.mxu2 }
 0x28d   :  { %v720_v34 = vunpack.c.l.bf16 %v709_v33  ;;  %v659_v58 = vadd.f32 %v658_v5, %v1307_v10 }
 0x28f   :  { %v797_v8 = vmul.f32 %v769_v35, %v720_v34  ;;  %v677_v18 = vmax.f32 %v659_v58, 0.0 }
 0x291   :  { %v807_v36 = vadd.f32 %v806_v17, %v797_v8  ;;  %v699_v54 = vadd.f32 %v688_v41, %v677_v18 }
 0x293   :  { %v710_v7 = vpack.c.bf16 %v699_v54, %v699_v54 }
 0x294   :  { %v661_v37 = vpop.f32.mrf.mxu2 }
 0x295   :  { %v721_v38 = vunpack.c.l.bf16 %v710_v7  ;;  %v662_v40 = vadd.f32 %v661_v37, %v1309_v21 }
 0x297   :  { %v798_v16 = vmul.f32 %v774_v28, %v721_v38  ;;  %v678_v44 = vmax.f32 %v662_v40, 0.0 }
 0x299   :  { %v808_v45 = vadd.f32 %v807_v36, %v798_v16  ;;  %v700_v9 = vadd.f32 %v689_v52, %v678_v44 }
 0x29b   :  { %v711_v10 = vpack.c.bf16 %v700_v9, %v700_v9 }
 0x29c   :  { %v663_v50 = vpop.f32.mrf.mxu2 }
 0x29d   :  { %v722_v48 = vunpack.c.l.bf16 %v711_v10  ;;  %v664_v49 = vadd.f32 %v663_v50, %v1312_v26 }
 0x29f   :  { %v799_v20 = vmul.f32 %v779_v30, %v722_v48  ;;  %v679_v46 = vmax.f32 %v664_v49, 0.0 }
 0x2a1   :  { %v809_v51 = vadd.f32 %v808_v45, %v799_v20  ;;  %v701_v11 = vadd.f32 %v690_v47, %v679_v46 }
 0x2a3   :  { %v712_v21 = vpack.c.bf16 %v701_v11, %v701_v11 }
 0x2a4   :  { %v666_v56 = vpop.f32.mrf.mxu2 }
 0x2a5   :  { %v723_v43 = vunpack.c.l.bf16 %v712_v21  ;;  %v667_v15 = vadd.f32 %v666_v56, %v1315_v31  ;;  %v824_v31 = vpop.permute.xlu2 %823 }
 0x2a6   :  { %v826_v63 = vperm.slane %v824_v31, 0 }
 0x2a7   :  { %v800_v57 = vmul.f32 %v784_v39, %v723_v43  ;;  %v680_v59 = vmax.f32 %v667_v15, 0.0 }
 0x2a9   :  { %v810_v61 = vadd.f32 %v809_v51, %v800_v57  ;;  %v702_v62 = vadd.f32 %v691_v53, %v680_v59 }
 0x2ab   :  { %v713_v26 = vpack.c.bf16 %v702_v62, %v702_v62 }
 0x2ac   :  { %v668_v55 = vpop.f32.mrf.mxu2 }
 0x2ad   :  { %v724_v24 = vunpack.c.l.bf16 %v713_v26 }
 0x2af   :  { %v801_v42 = vmul.f32 %v789_v0, %v724_v24 }
 0x2b1   :  { %v812_v1 = vsel %vm811_vm4, %v801_v42, 0.0 }
 0x2b2   :  { %v813_v2 = vadd.f32 %v812_v1, %v810_v61 }
 0x2b4   :  { %v814_v3 = vrot.slane %v813_v2, 4 }
 0x2b6   :  { %v815_v12 = vadd.f32 %v814_v3, %v813_v2 }
 0x2b8   :  { %v816_v13 = vrot.slane %v815_v12, 2 }
 0x2ba   :  { %v817_v14 = vadd.f32 %v816_v13, %v815_v12 }
 0x2bc   :  { %v818_v23 = vrot.slane %v817_v14, 1 }
 0x2be   :  { %v819_v4 = vadd.f32 %v818_v23, %v817_v14 }
 0x2c0   :  { %v827_v25 = vadd.f32 %v826_v63, %v819_v4 }
 0x2c2   :  { %828 = vst [vmem:[%s1342_s9] sm:$0x1] %v827_v25 }

</bundles_post_ra>
